<compile_context>
chip_gen: v7x
topology: tpu7x:2x2x1
jax: 0.10.0
libtpu: 0.0.40
codegen_flags: <defaults>
</compile_context>

<pallas_src>
import functools

import jax
import jax.numpy as jnp
from jax.experimental import pallas as pl
from jax.experimental.pallas import tpu as pltpu

BN_EPS = 1e-5
DROPOUT_P = 0.5


def _i32_const(v):
    """Hex constant (0 .. 2^32-1) as a two's-complement int32 scalar."""
    v &= 0xFFFFFFFF
    if v >= 0x80000000:
        v -= 1 << 32
    return jnp.int32(v)


def _dropout_keep_mask(seed_scalar, row_start, shape):
    """Deterministic keep-mask (float32 0/1) with P(keep) = 1 - DROPOUT_P = 0.5.

    Counter-based splitmix32-style hash of the *global* element index, salted with
    the seed.  Pure int32 VPU ops: portable to Mosaic TPU and interpret mode
    (unlike pltpu.prng_random_bits), and independent of the batch tiling.
    """
    rows, cols = shape
    r = jax.lax.broadcasted_iota(jnp.int32, shape, 0)
    c = jax.lax.broadcasted_iota(jnp.int32, shape, 1)
    idx = (r + row_start) * jnp.int32(cols) + c
    z = idx ^ (seed_scalar * _i32_const(0x9E3779B9))
    z = z ^ jax.lax.shift_right_logical(z, jnp.int32(16))
    z = z * _i32_const(0x7FEB352D)
    z = z ^ jax.lax.shift_right_logical(z, jnp.int32(15))
    z = z * _i32_const(0x846CA68B)
    z = z ^ jax.lax.shift_right_logical(z, jnp.int32(16))
    # Top bit of the mixed hash is uniform -> sign test gives exactly P(keep)=0.5.
    return (z >= 0).astype(jnp.float32)


def _imgnn_kernel(seed_ref, x_ref, w1t_ref, w2t_ref, o_ref, sum_ref, sumsq_ref,
                  *, training, n_rows, tile_m, d_out):
    phase = pl.program_id(0)   # 0: accumulate batch stats, 1: normalize + project
    tile = pl.program_id(1)    # batch tile index

    # ---- Linear 1 (no bias): bf16 operands on the MXU, f32 accumulation ----------
    h = jnp.dot(x_ref[...].astype(jnp.bfloat16), w1t_ref[...],
                preferred_element_type=jnp.float32)            # (tile_m, d_out) f32

    @pl.when(phase == 0)
    def _accumulate_stats():
        @pl.when(tile == 0)
        def _init():
            sum_ref[...] = jnp.zeros_like(sum_ref)
            sumsq_ref[...] = jnp.zeros_like(sumsq_ref)
        # Single fused sweep over h: sum and sum-of-squares together.
        sum_ref[...] += jnp.sum(h, axis=0, keepdims=True)
        sumsq_ref[...] += jnp.sum(h * h, axis=0, keepdims=True)
        # The output block is still written back this phase; keep it deterministic
        # (it is overwritten with real values in phase 1).
        o_ref[...] = jnp.zeros_like(o_ref)

    @pl.when(phase == 1)
    def _normalize_and_project():
        inv_n = jnp.float32(1.0 / n_rows)
        mean = sum_ref[...] * inv_n                                        # (1, d_out)
        var = jnp.maximum(sumsq_ref[...] * inv_n - mean * mean, 0.0)       # biased var
        scale = jax.lax.rsqrt(var + jnp.float32(BN_EPS))
        if training:
            # Fold the inverted-dropout scale 1/(1-p) into the BN scale.
            scale = scale * jnp.float32(1.0 / (1.0 - DROPOUT_P))
        hn = (h - mean) * scale
        if training:
            keep = _dropout_keep_mask(seed_ref[0], tile * tile_m, (tile_m, d_out))
            hn = hn * keep
        # ---- Linear 2 (no bias) ----------------------------------------------------
        out = jnp.dot(hn.astype(jnp.bfloat16), w2t_ref[...],
                      preferred_element_type=jnp.float32)
        o_ref[...] = out.astype(o_ref.dtype)


def _pick_tile_m(n):
    for tm in (256, 128, 64, 32, 16, 8):
        if n % tm == 0:
            return tm
    return n  # full-batch block (allowed when equal to the array dim)


def prepare_imgnn_params(w1, w2):
    """One-time conversion of PyTorch-layout weights (out, in) f32 ->
    pre-transposed (in, out) bf16, so no per-call transpose/cast traffic."""
    w1t = jnp.asarray(w1, jnp.float32).T.astype(jnp.bfloat16)   # (Din, Dout)
    w2t = jnp.asarray(w2, jnp.float32).T.astype(jnp.bfloat16)   # (Dout, Dout)
    return w1t, w2t


@functools.partial(jax.jit, static_argnames=("training",))
def imgnn_forward(x, w1t, w2t, seed, *, training=True):
    """x: (N, Din) f32; w1t: (Din, Dout) bf16; w2t: (Dout, Dout) bf16; seed: int."""
    n, d_in = x.shape
    d_in2, d_out = w1t.shape
    assert d_in == d_in2 and w2t.shape == (d_out, d_out)

    tile_m = _pick_tile_m(n)
    n_tiles = n // tile_m
    seed_arr = jnp.asarray(seed, jnp.int32).reshape((1,))

    kernel = functools.partial(_imgnn_kernel, training=training,
                               n_rows=n, tile_m=tile_m, d_out=d_out)

    # Rough VMEM budget: double-buffered x/out tiles + resident bf16 weights + stats.
    vmem_est = (2 * tile_m * d_in * 4 + 2 * tile_m * d_out * 4
                + 2 * d_in * d_out * 2 + 2 * d_out * d_out * 2 + 2 * d_out * 4)
    vmem_limit = int(min(64 * 2**20, max(2 * vmem_est, 16 * 2**20)))

    grid_spec = pltpu.PrefetchScalarGridSpec(
        num_scalar_prefetch=1,               # seed lands in SMEM
        grid=(2, n_tiles),                   # (phase, batch tile)
        in_specs=[
            pl.BlockSpec((tile_m, d_in), lambda p, i, seed: (i, 0)),   # x: streamed
            pl.BlockSpec((d_in, d_out), lambda p, i, seed: (0, 0)),    # W1^T: resident
            pl.BlockSpec((d_out, d_out), lambda p, i, seed: (0, 0)),   # W2^T: resident
        ],
        out_specs=pl.BlockSpec((tile_m, d_out), lambda p, i, seed: (i, 0)),
        scratch_shapes=[pltpu.VMEM((1, d_out), jnp.float32),   # sum(h)   per feature
                        pltpu.VMEM((1, d_out), jnp.float32)],  # sum(h^2) per feature
    )

    return pl.pallas_call(
        kernel,
        out_shape=jax.ShapeDtypeStruct((n, d_out), x.dtype),
        grid_spec=grid_spec,
        compiler_params=pltpu.CompilerParams(
            # Both axes carry dependencies (stats accumulate along tiles; phase 1
            # consumes phase-0 scratch), so both are sequential.
            dimension_semantics=("arbitrary", "arbitrary"),
            vmem_limit_bytes=vmem_limit,
        ),
    )(seed_arr, x, w1t, w2t)


if __name__ == "__main__":
    # Small-but-MXU-friendly shapes (>=128 rows per matmul, 2 batch tiles).
    N, INPUT_DIM, OUTPUT_DIM = 512, 256, 128

    key = jax.random.PRNGKey(0)
    kx, k1, k2 = jax.random.split(key, 3)
    x = jax.random.normal(kx, (N, INPUT_DIM), jnp.float32)
    # PyTorch-layout weights (out, in), roughly unit-variance activations.
    w1 = jax.random.normal(k1, (OUTPUT_DIM, INPUT_DIM), jnp.float32) / jnp.sqrt(
        jnp.float32(INPUT_DIM))
    w2 = jax.random.normal(k2, (OUTPUT_DIM, OUTPUT_DIM), jnp.float32) / jnp.sqrt(
        jnp.float32(OUTPUT_DIM))

    # One-time weight prep (transpose + bf16), outside the jitted forward.
    w1t, w2t = prepare_imgnn_params(w1, w2)

    # Training-mode forward (batch-stat BN + dropout).
    out = jax.block_until_ready(imgnn_forward(x, w1t, w2t, seed=0, training=True))
    assert out.shape == (N, OUTPUT_DIM), out.shape
    assert bool(jnp.all(jnp.isfinite(out)))

    # Deterministic path (dropout off) vs. a pure-JAX reference using the same
    # bf16 matmul operands and f32 accumulation.
    out_nodrop = jax.block_until_ready(
        imgnn_forward(x, w1t, w2t, seed=0, training=False))
    h_ref = jnp.dot(x.astype(jnp.bfloat16), w1t, preferred_element_type=jnp.float32)
    mean = h_ref.mean(0, keepdims=True)
    var = jnp.maximum((h_ref * h_ref).mean(0, keepdims=True) - mean * mean, 0.0)
    hn_ref = (h_ref - mean) * jax.lax.rsqrt(var + BN_EPS)
    ref = jnp.dot(hn_ref.astype(jnp.bfloat16), w2t, preferred_element_type=jnp.float32)
    assert bool(jnp.allclose(out_nodrop, ref.astype(out_nodrop.dtype),
                             atol=2e-2, rtol=2e-2))

    print("KERNEL_OK")
</pallas_src>

<mosaic_0001>
module attributes {stable_mosaic.version = 11 : i64} {
  func.func @_imgnn_kernel(%arg0: i32, %arg1: i32, %arg2: memref<1xi32, #tpu.memory_space<smem>>, %arg3: memref<256x256xf32, #tpu.memory_space<vmem>>, %arg4: memref<256x128xbf16, #tpu.memory_space<vmem>>, %arg5: memref<128x128xbf16, #tpu.memory_space<vmem>>, %arg6: memref<256x128xf32, #tpu.memory_space<vmem>>, %arg7: memref<1x128xf32, #tpu.memory_space<vmem>>, %arg8: memref<1x128xf32, #tpu.memory_space<vmem>>) attributes {dimension_semantics = [#tpu.dimension_semantics<arbitrary>, #tpu.dimension_semantics<arbitrary>], iteration_bounds = array<i64: 2, 2>, scalar_prefetch = 1 : i64, scratch_operands = 2 : i64, tpu.core_type = #tpu.core_type<tc>, window_params = [{transform_indices = @transform_0, window_bounds = array<i64: 256, 256>}, {pipeline_mode = #tpu.pipeline_mode<synchronous>, transform_indices = @transform_1, window_bounds = array<i64: 256, 128>}, {pipeline_mode = #tpu.pipeline_mode<synchronous>, transform_indices = @transform_2, window_bounds = array<i64: 128, 128>}, {transform_indices = @transform_3, window_bounds = array<i64: 256, 128>}]} {
    %c0 = arith.constant 0 : index
    %c0_0 = arith.constant 0 : index
    %0 = vector.load %arg3[%c0, %c0_0] : memref<256x256xf32, #tpu.memory_space<vmem>>, vector<256x256xf32>
    %1 = arith.truncf %0 : vector<256x256xf32> to vector<256x256xbf16>
    %c0_1 = arith.constant 0 : index
    %c0_2 = arith.constant 0 : index
    %2 = vector.load %arg4[%c0_1, %c0_2] : memref<256x128xbf16, #tpu.memory_space<vmem>>, vector<256x128xbf16>
    %cst = arith.constant dense<0.000000e+00> : vector<256x128xf32>
    %3 = tpu.matmul %1, %2, %cst {dimension_numbers = #tpu.dot_dimension_numbers<[1], [0], [0], [1], [0, 0, 1, 1], [], []>} : vector<256x256xbf16>, vector<256x128xbf16>, vector<256x128xf32> -> vector<256x128xf32>
    %c0_i32 = arith.constant 0 : i32
    %4 = arith.cmpi eq, %arg0, %c0_i32 : i32
    %5 = arith.extui %4 : i1 to i32
    %c0_i32_3 = arith.constant 0 : i32
    %6 = arith.cmpi ne, %5, %c0_i32_3 : i32
    scf.if %6 {
      %c0_i32_5 = arith.constant 0 : i32
      %10 = arith.cmpi eq, %arg1, %c0_i32_5 : i32
      %11 = arith.extui %10 : i1 to i32
      %c0_i32_6 = arith.constant 0 : i32
      %12 = arith.cmpi ne, %11, %c0_i32_6 : i32
      scf.if %12 {
        %cst_20 = arith.constant 0.000000e+00 : f32
        %26 = vector.broadcast %cst_20 : f32 to vector<1x128xf32>
        %c0_21 = arith.constant 0 : index
        %c0_22 = arith.constant 0 : index
        %27 = vector.load %arg7[%c0_21, %c0_22] : memref<1x128xf32, #tpu.memory_space<vmem>>, vector<1x128xf32>
        tpu.vector_store %arg7[%c0_21, %c0_22], %26 {strides = array<i32>} : memref<1x128xf32, #tpu.memory_space<vmem>>, vector<1x128xf32>,
        %cst_23 = arith.constant 0.000000e+00 : f32
        %28 = vector.broadcast %cst_23 : f32 to vector<1x128xf32>
        %c0_24 = arith.constant 0 : index
        %c0_25 = arith.constant 0 : index
        %29 = vector.load %arg8[%c0_24, %c0_25] : memref<1x128xf32, #tpu.memory_space<vmem>>, vector<1x128xf32>
        tpu.vector_store %arg8[%c0_24, %c0_25], %28 {strides = array<i32>} : memref<1x128xf32, #tpu.memory_space<vmem>>, vector<1x128xf32>,
      } else {
      }
      %c0_7 = arith.constant 0 : index
      %c0_8 = arith.constant 0 : index
      %13 = vector.load %arg7[%c0_7, %c0_8] : memref<1x128xf32, #tpu.memory_space<vmem>>, vector<1x128xf32>
      %cst_9 = arith.constant dense<0.000000e+00> : vector<128xf32>
      %14 = vector.multi_reduction <add>, %3, %cst_9 [0] : vector<256x128xf32> to vector<128xf32>
      %15 = vector.shape_cast %14 : vector<128xf32> to vector<1x128xf32>
      %16 = arith.addf %13, %15 : vector<1x128xf32>
      %c0_10 = arith.constant 0 : index
      %c0_11 = arith.constant 0 : index
      %17 = vector.load %arg7[%c0_10, %c0_11] : memref<1x128xf32, #tpu.memory_space<vmem>>, vector<1x128xf32>
      tpu.vector_store %arg7[%c0_10, %c0_11], %16 {strides = array<i32>} : memref<1x128xf32, #tpu.memory_space<vmem>>, vector<1x128xf32>,
      %c0_12 = arith.constant 0 : index
      %c0_13 = arith.constant 0 : index
      %18 = vector.load %arg8[%c0_12, %c0_13] : memref<1x128xf32, #tpu.memory_space<vmem>>, vector<1x128xf32>
      %19 = arith.mulf %3, %3 : vector<256x128xf32>
      %cst_14 = arith.constant dense<0.000000e+00> : vector<128xf32>
      %20 = vector.multi_reduction <add>, %19, %cst_14 [0] : vector<256x128xf32> to vector<128xf32>
      %21 = vector.shape_cast %20 : vector<128xf32> to vector<1x128xf32>
      %22 = arith.addf %18, %21 : vector<1x128xf32>
      %c0_15 = arith.constant 0 : index
      %c0_16 = arith.constant 0 : index
      %23 = vector.load %arg8[%c0_15, %c0_16] : memref<1x128xf32, #tpu.memory_space<vmem>>, vector<1x128xf32>
      tpu.vector_store %arg8[%c0_15, %c0_16], %22 {strides = array<i32>} : memref<1x128xf32, #tpu.memory_space<vmem>>, vector<1x128xf32>,
      %cst_17 = arith.constant 0.000000e+00 : f32
      %24 = vector.broadcast %cst_17 : f32 to vector<256x128xf32>
      %c0_18 = arith.constant 0 : index
      %c0_19 = arith.constant 0 : index
      %25 = vector.load %arg6[%c0_18, %c0_19] : memref<256x128xf32, #tpu.memory_space<vmem>>, vector<256x128xf32>
      tpu.vector_store %arg6[%c0_18, %c0_19], %24 {strides = array<i32>} : memref<256x128xf32, #tpu.memory_space<vmem>>, vector<256x128xf32>,
    } else {
    }
    %c1_i32 = arith.constant 1 : i32
    %7 = arith.cmpi eq, %arg0, %c1_i32 : i32
    %8 = arith.extui %7 : i1 to i32
    %c0_i32_4 = arith.constant 0 : i32
    %9 = arith.cmpi ne, %8, %c0_i32_4 : i32
    scf.if %9 {
      %c0_5 = arith.constant 0 : index
      %c0_6 = arith.constant 0 : index
      %10 = vector.load %arg7[%c0_5, %c0_6] : memref<1x128xf32, #tpu.memory_space<vmem>>, vector<1x128xf32>
      %cst_7 = arith.constant 0.001953125 : f32
      %11 = vector.broadcast %cst_7 : f32 to vector<1x128xf32>
      %12 = arith.mulf %10, %11 : vector<1x128xf32>
      %c0_8 = arith.constant 0 : index
      %c0_9 = arith.constant 0 : index
      %13 = vector.load %arg8[%c0_8, %c0_9] : memref<1x128xf32, #tpu.memory_space<vmem>>, vector<1x128xf32>
      %cst_10 = arith.constant 0.001953125 : f32
      %14 = vector.broadcast %cst_10 : f32 to vector<1x128xf32>
      %15 = arith.mulf %13, %14 : vector<1x128xf32>
      %16 = arith.mulf %12, %12 : vector<1x128xf32>
      %17 = arith.subf %15, %16 : vector<1x128xf32>
      %cst_11 = arith.constant 0.000000e+00 : f32
      %18 = vector.broadcast %cst_11 : f32 to vector<1x128xf32>
      %19 = arith.maximumf %17, %18 : vector<1x128xf32>
      %cst_12 = arith.constant 9.99999974E-6 : f32
      %20 = vector.broadcast %cst_12 : f32 to vector<1x128xf32>
      %21 = arith.addf %19, %20 : vector<1x128xf32>
      %22 = math.rsqrt %21 : vector<1x128xf32>
      %cst_13 = arith.constant 2.000000e+00 : f32
      %23 = vector.broadcast %cst_13 : f32 to vector<1x128xf32>
      %24 = arith.mulf %22, %23 : vector<1x128xf32>
      %25 = vector.broadcast %12 : vector<1x128xf32> to vector<256x128xf32>
      %26 = arith.subf %3, %25 : vector<256x128xf32>
      %27 = vector.broadcast %24 : vector<1x128xf32> to vector<256x128xf32>
      %28 = arith.mulf %26, %27 : vector<256x128xf32>
      %c0_14 = arith.constant 0 : index
      %29 = memref.load %arg2[%c0_14] : memref<1xi32, #tpu.memory_space<smem>>
      %c256_i32 = arith.constant 256 : i32
      %30 = arith.muli %arg1, %c256_i32 : i32
      %31 = tpu.iota {dimensions = array<i32: 0>} : vector<256x128xi32>
      %32 = tpu.iota {dimensions = array<i32: 1>} : vector<256x128xi32>
      %33 = vector.broadcast %30 : i32 to vector<256x128xi32>
      %34 = arith.addi %31, %33 : vector<256x128xi32>
      %c128_i32 = arith.constant 128 : i32
      %35 = vector.broadcast %c128_i32 : i32 to vector<256x128xi32>
      %36 = arith.muli %34, %35 : vector<256x128xi32>
      %37 = arith.addi %36, %32 : vector<256x128xi32>
      %c-1640531527_i32 = arith.constant -1640531527 : i32
      %38 = arith.muli %29, %c-1640531527_i32 : i32
      %39 = vector.broadcast %38 : i32 to vector<256x128xi32>
      %40 = arith.xori %37, %39 : vector<256x128xi32>
      %c16_i32 = arith.constant 16 : i32
      %41 = vector.broadcast %c16_i32 : i32 to vector<256x128xi32>
      %42 = arith.shrui %40, %41 : vector<256x128xi32>
      %43 = arith.xori %40, %42 : vector<256x128xi32>
      %c2146121005_i32 = arith.constant 2146121005 : i32
      %44 = vector.broadcast %c2146121005_i32 : i32 to vector<256x128xi32>
      %45 = arith.muli %43, %44 : vector<256x128xi32>
      %c15_i32 = arith.constant 15 : i32
      %46 = vector.broadcast %c15_i32 : i32 to vector<256x128xi32>
      %47 = arith.shrui %45, %46 : vector<256x128xi32>
      %48 = arith.xori %45, %47 : vector<256x128xi32>
      %c-2073254261_i32 = arith.constant -2073254261 : i32
      %49 = vector.broadcast %c-2073254261_i32 : i32 to vector<256x128xi32>
      %50 = arith.muli %48, %49 : vector<256x128xi32>
      %c16_i32_15 = arith.constant 16 : i32
      %51 = vector.broadcast %c16_i32_15 : i32 to vector<256x128xi32>
      %52 = arith.shrui %50, %51 : vector<256x128xi32>
      %53 = arith.xori %50, %52 : vector<256x128xi32>
      %c0_i32_16 = arith.constant 0 : i32
      %54 = vector.broadcast %c0_i32_16 : i32 to vector<256x128xi32>
      %55 = arith.cmpi sge, %53, %54 : vector<256x128xi32>
      %56 = arith.extui %55 : vector<256x128xi1> to vector<256x128xi32>
      %57 = arith.sitofp %56 : vector<256x128xi32> to vector<256x128xf32>
      %58 = arith.mulf %28, %57 : vector<256x128xf32>
      %59 = arith.truncf %58 : vector<256x128xf32> to vector<256x128xbf16>
      %c0_17 = arith.constant 0 : index
      %c0_18 = arith.constant 0 : index
      %60 = vector.load %arg5[%c0_17, %c0_18] : memref<128x128xbf16, #tpu.memory_space<vmem>>, vector<128x128xbf16>
      %cst_19 = arith.constant dense<0.000000e+00> : vector<256x128xf32>
      %61 = tpu.matmul %59, %60, %cst_19 {dimension_numbers = #tpu.dot_dimension_numbers<[1], [0], [0], [1], [0, 0, 1, 1], [], []>} : vector<256x128xbf16>, vector<128x128xbf16>, vector<256x128xf32> -> vector<256x128xf32>
      %c0_20 = arith.constant 0 : index
      %c0_21 = arith.constant 0 : index
      %62 = vector.load %arg6[%c0_20, %c0_21] : memref<256x128xf32, #tpu.memory_space<vmem>>, vector<256x128xf32>
      tpu.vector_store %arg6[%c0_20, %c0_21], %61 {strides = array<i32>} : memref<256x128xf32, #tpu.memory_space<vmem>>, vector<256x128xf32>,
    } else {
    }
    return
  }
  func.func @transform_0(%arg0: i32, %arg1: i32, %arg2: memref<1xi32, #tpu.memory_space<smem>>) -> (i32, i32) {
    %c0_i32 = arith.constant 0 : i32
    %c0_i32_0 = arith.constant 0 : i32
    return %arg1, %c0_i32 : i32, i32
  }
  func.func @transform_1(%arg0: i32, %arg1: i32, %arg2: memref<1xi32, #tpu.memory_space<smem>>) -> (i32, i32) {
    %c0_i32 = arith.constant 0 : i32
    %c0_i32_0 = arith.constant 0 : i32
    %c0_i32_1 = arith.constant 0 : i32
    return %c0_i32, %c0_i32_0 : i32, i32
  }
  func.func @transform_2(%arg0: i32, %arg1: i32, %arg2: memref<1xi32, #tpu.memory_space<smem>>) -> (i32, i32) {
    %c0_i32 = arith.constant 0 : i32
    %c0_i32_0 = arith.constant 0 : i32
    %c0_i32_1 = arith.constant 0 : i32
    return %c0_i32, %c0_i32_0 : i32, i32
  }
  func.func @transform_3(%arg0: i32, %arg1: i32, %arg2: memref<1xi32, #tpu.memory_space<smem>>) -> (i32, i32) {
    %c0_i32 = arith.constant 0 : i32
    %c0_i32_0 = arith.constant 0 : i32
    return %arg1, %c0_i32 : i32, i32
  }
}

</mosaic_0001>

<bundles_post_ra>
// kernel: imgnn_forward.1
= control target key start
LH: loop header
LB: loop body
LE: loop exit
PB: predicated region body
PF: predicated region fallthrough
CT: control target
= control target key end

     0   :  { %s3344_s0 = inlined_call_operand.<no memory space> [shape: s32[1], index: 0, kind: input, shape index: {}]   ;;  %s3345_s1 = inlined_call_operand.hbm [shape: f32[512,256], index: 1, kind: input, shape index: {}]   ;;  %s3346_s2 = inlined_call_operand.hbm [shape: bf16[256,128], index: 2, kind: input, shape index: {}]   ;;  %s3347_s3 = inlined_call_operand.hbm [shape: bf16[128,128], index: 3, kind: input, shape index: {}]   ;;  %s3348_s4 = inlined_call_operand.hbm [shape: f32[512,128], index: 4, kind: output, shape index: {}]  }
   0x1   :  { %9 = sst [smem:[#allocation5]] %s3344_s0 }
   0x2   :  { %10 = vsyncpa [#allocation7], 0 }
   0x3   :  { %12 = vsyncpa [#allocation7 + $0x1], 0 }
   0x4   :  { %13 = vsyncpa [#allocation10], 0 }
   0x5   :  { %14 = vsyncpa [#allocation8], 0 }
   0x6   :  { %16 = vsyncpa [#allocation8 + $0x1], 0  ;;  %s2471_s17 = smov 0   ;;  %s2473_s18 = smov 0  }
   0x7   :  { %s2475_s19 = smov 0   ;;  %s2477_s20 = smov 0  }
   0x8   :  { %s2479_s21 = smov 0   ;;  %s2481_s22 = smov 0  }
   0x9   :  { %s2483_s23 = smov 0   ;;  %s2485_s0 = smov 0  }
   0xa LB: > { %s1807_s24 = sadd.s32 4294967295, %s2428_s0   ;;  %s1808_s25 = sadd.s32 4294967294, %s2428_s0   ;;  %s2428_s0 = sphi %s2485_s0, %s22_s0   ;;  %s2424_s23 = sphi %s2483_s23, %s3384_s23   ;;  %s2420_s22 = sphi %s2481_s22, %s3383_s22   ;;  %s2416_s21 = sphi %s2479_s21, %s3382_s21   ;;  %s2412_s20 = sphi %s2477_s20, %s3381_s20   ;;  %s2408_s19 = sphi %s2475_s19, %s3380_s19   ;;  %s2404_s18 = sphi %s2473_s18, %s3379_s18   ;;  %s2400_s17 = sphi %s2471_s17, %s3378_s17  }
   0xb   : > { %p54_p0 = scmp.ne.s32.totalorder %s2404_s18, %s2400_s17  ;;  %p2515_p1 = scmp.eq.s32.totalorder %s1807_s24, 0 }
   0xc   : > { %p2519_p2 = scmp.eq.s32.totalorder %s1807_s24, 3  ;;  %p126_p3 = scmp.eq.s32.totalorder %s1808_s25, 3 }
   0xd   : > { %s3356_s26 = scalar_select %p2515_p1, 1, 0 }
   0xe   : > { %s3357_s27 = scalar_select %p2519_p2, 1, 0 }
   0xf   : > { %p2525_p4 = por %p2515_p1, %p54_p0  ;;  %p1809_p5 = scmp.ge.s32.totalorder %s2428_s0, 1 }
  0x10   : > { %p2530_p6 = por %p126_p3, %p54_p0  ;;  %p133_p7 = scmp.lt.s32.totalorder %s2428_s0, 5 }
  0x11   : > { %s3358_s28 = scalar_select %p2525_p4, 1, 0 }
  0x12   : > { %s3359_s29 = scalar_select %p2530_p6, 1, 0 }
  0x13   : > { %p2535_p8 = pnand %p1809_p5, %p133_p7  ;;  %s2430_s5 = smov [#allocation9]  }
  0x14   : > { %s145_s6 = sshll.u32 %s2430_s5, 4  ;;  %s2431_s8 = smov [#allocation11]   ;;  %s146_s6 = int_to_ptr.vmem [resolvable:$true] %s145_s6 }
  0x15   : > { %s3360_s30 = scalar_select %p2535_p8, 1, 0 }
  0x16   : > { %p2118_p9 = pneg %p2535_p8  ;;  %s158_s9 = sshll.u32 %s2431_s8, 4  ;;  %s2547_s9 = int_to_ptr.vmem [resolvable:$true] %s158_s9 }
  0x17   : > { %s2240_s12 = scalar_lea.hbm %s3346_s2, 2048 }
  0x18   : > { %p2543_p10 = pnand %p2118_p9, %p2515_p1  ;;  %p2241_p11 = scmp.ne.s32.totalorder %s3346_s2, %s2240_s12 }
  0x19   : > { %p2247_p3 = scmp.lt.u32.totalorder %s2240_s12, %s3346_s2 }
  0x1a   : > { %p2242_p12 = pneg %p2543_p10 }
  0x1c   : > { %p2243_p13 = pnand %p2242_p12, %p2241_p11 }
  0x1e   : > { %p2244_p0 = pneg %p2243_p13 }
  0x20   : > { %p2249_p5 = pnand %p2247_p3, %p2244_p0 }
  0x22   : > { %2252 = shalt.err (!%p2249_p5)
}
  0x23   : > { %s2253_s24 = scalar_lea.vmem %s146_s6, 2048  ;;  %p2261_p1 = scmp.lt.s32.totalorder %s146_s6, %s146_s6 }
  0x24   : > { %p2254_p7 = scmp.ne.s32.totalorder %s146_s6, %s2253_s24  ;;  %p2262_p4 = scmp.lt.s32.totalorder %s2253_s24, %s2253_s24 }
  0x26   : > { %p2256_p9 = pnand %p2254_p7, %p2242_p12  ;;  %p2263_p8 = por %p2262_p4, %p2261_p1 }
  0x28   : > { %p2257_p6 = pneg %p2256_p9 }
  0x2a   : > { %p2264_p2 = pnand %p2263_p8, %p2257_p6 }
  0x2c   : > { %2267 = shalt.err (!%p2264_p2)
}
  0x2d   : > { %s2432_s25 = smov 64   ;;  %s2433_s5 = smov 4  }
  0x2e   : > { %2121 = dma.hbm_to_vmem [thread:$0]  (!%p2543_p10), %s3346_s2, 2048, %s146_s6, [#allocation10], %s2432_s25, %s2432_s25, %s2433_s5  }
  0x2f   : > { %s2268_s13 = scalar_lea.hbm %s3347_s3, 1024 }
  0x30   : > { %p2269_p11 = scmp.ne.s32.totalorder %s3347_s3, %s2268_s13  ;;  %p2275_p4 = scmp.lt.u32.totalorder %s2268_s13, %s3347_s3 }
  0x32   : > { %p2271_p1 = pnand %p2269_p11, %p2242_p12 }
  0x34   : > { %p2272_p2 = pneg %p2271_p1 }
  0x36   : > { %p2277_p6 = pnand %p2275_p4, %p2272_p2 }
  0x38   : > { %2280 = shalt.err (!%p2277_p6)
}
  0x39   : > { %s2281_s6 = scalar_lea.vmem %s2547_s9, 1024  ;;  %p2289_p3 = scmp.lt.s32.totalorder %s2547_s9, %s2547_s9 }
  0x3a   : > { %p2282_p8 = scmp.ne.s32.totalorder %s2547_s9, %s2281_s6  ;;  %p2290_p5 = scmp.lt.s32.totalorder %s2281_s6, %s2281_s6 }
  0x3c   : > { %p2284_p13 = pnand %p2282_p8, %p2242_p12  ;;  %p2291_p7 = por %p2290_p5, %p2289_p3 }
  0x3e   : > { %p2285_p0 = pneg %p2284_p13 }
  0x40   : > { %p2292_p9 = pnand %p2291_p7, %p2285_p0 }
  0x42   : > { %2295 = shalt.err (!%p2292_p9)
}
  0x43   : > { %2124 = dma.hbm_to_vmem [thread:$0]  (!%p2543_p10), %s3347_s3, 1024, %s2547_s9, [#allocation10], %s2432_s25, %s2432_s25, %s2433_s5  }
  0x44   : > { %s31_s11 = sadd.s32 1, %s2420_s22  ;;  %s34_s12 = sadd.s32 1, %s2424_s23 }
  0x45   : > { %p32_p12 = scmp.ge.s32.totalorder %s31_s11, 2  ;;  %s41_s7 = sadd.s32 1, %s2408_s19 }
  0x46   : > { %p48_p11 = scmp.ne.s32.totalorder %s2408_s19, %s2404_s18  ;;  %p49_p1 = scmp.eq.s32.totalorder %s2428_s0, 0 }
  0x47   : > { %s3386_s11 = smov (%p32_p12, %s31_s11), 0  ;;  %s3388_s12 = smov (!%p32_p12, %s34_s12), %s2424_s23 }
  0x48   : > { %s38_s13 = ssub.s32 %s2420_s22, %s3386_s11  ;;  %p2607_p2 = por %p49_p1, %p48_p11 }
  0x49   : > { %p36_p10 = scmp.ge.s32.totalorder %s3388_s12, 2  ;;  %p39_p4 = scmp.eq.s32.totalorder %s38_s13, 0 }
  0x4a   : > { %p3363_p6 = scmp.ne.s32.totalorder %s3357_s27, 0  ;;  %p2135_p13 = scmp.lt.s32.totalorder %s2428_s0, 4 }
  0x4b   : > { %s3390_s12 = smov (%p36_p10, %s3388_s12), 0  ;;  %s172_s5 = sand.u32 1, %s2408_s19  }
  0x4c   : > { %p2613_p8 = por %p3363_p6, %p48_p11  ;;  %s1888_s15 = sshll.u32 %s2420_s22, 13 }
  0x4d   : > { %s2621_s25 = scalar_select %p39_p4, %s2408_s19, %s41_s7  }
  0x4e   : > { %s1813_s16 = sshll.u32 %s172_s5, 9  ;;  %s2628_s8 = scalar_lea.hbm %s3345_s1, %s1888_s15 }
  0x4f   : > { %s176_s27 = scalar_lea.vmem [#allocation6], %s1813_s16  ;;  %p2632_p0 = pnand %p2135_p13, %p2607_p2 }
  0x50   : > { %s184_s10 = sshll.u32 %s176_s27, 4  ;;  %s2638_s7 = scalar_lea.sflag [#allocation7], %s172_s5  ;;  %s2636_s10 = int_to_ptr.vmem [resolvable:$true] %s184_s10 }
  0x51   : > { %s2296_s24 = scalar_lea.hbm %s2628_s8, 8192  ;;  %p2298_p5 = pneg %p2632_p0 }
  0x52   : > { %p2297_p3 = scmp.ne.s32.totalorder %s2628_s8, %s2296_s24  ;;  %s2301_s16 = scalar_lea.hbm %s3345_s1, 16384 }
  0x53   : > { %p2302_p12 = scmp.lt.u32.totalorder %s2628_s8, %s3345_s1  ;;  %p2303_p11 = scmp.lt.u32.totalorder %s2301_s16, %s2296_s24 }
  0x54   : > { %p2299_p7 = pnand %p2298_p5, %p2297_p3  ;;  %p2305_p2 = scmp.lt.u32.totalorder %s2296_s24, %s2628_s8 }
  0x55   : > { %p2304_p1 = por %p2303_p11, %p2302_p12 }
  0x56   : > { %p2300_p9 = pneg %p2299_p7 }
  0x57   : > { %p2306_p10 = por %p2305_p2, %p2304_p1 }
  0x59   : > { %p2307_p4 = pnand %p2306_p10, %p2300_p9 }
  0x5b   : > { %2310 = shalt.err (!%p2307_p4)
}
  0x5c   : > { %s2311_s5 = scalar_lea.vmem %s2636_s10, 8192  ;;  %s2434_s15 = smov [#allocation6]  }
  0x5d   : > { %p2312_p6 = scmp.ne.s32.totalorder %s2636_s10, %s2311_s5  ;;  %s2316_s14 = sshll.u32 %s2434_s15, 4  ;;  %s2317_s14 = int_to_ptr.vmem [resolvable:$false] %s2316_s14 }
  0x5e   : > { %s2318_s6 = scalar_lea.vmem %s2317_s14, 16384  ;;  %p2319_p7 = scmp.lt.s32.totalorder %s2636_s10, %s2317_s14 }
  0x5f   : > { %p2314_p13 = pnand %p2312_p6, %p2298_p5  ;;  %p2320_p12 = scmp.lt.s32.totalorder %s2318_s6, %s2311_s5 }
  0x61   : > { %p2315_p3 = pneg %p2314_p13  ;;  %p2321_p11 = por %p2320_p12, %p2319_p7 }
  0x63   : > { %p2322_p1 = pnand %p2321_p11, %p2315_p3 }
  0x65   : > { %2325 = shalt.err (!%p2322_p1)
}
  0x66   : > { %s2435_s24 = smov 256   ;;  %s2436_s16 = smov 16  }
  0x67   : > { %2128 = dma.hbm_to_vmem [thread:$0]  (!%p2632_p0), %s2628_s8, 8192, %s2636_s10, %s2638_s7, %s2435_s24, %s2435_s24, %s2436_s16  }
  0x68   : > { %p3366_p5 = scmp.ne.s32.totalorder %s3360_s30, 0 }
  0x6a   : > { %196 = sbr.rel (%p3366_p5) target bundleno = 920 (0x398), region = 32 }
  0x71   : > { %s2669_s27 = sand.u32 1, %s2404_s18   ;;  %p3367_p9 = scmp.ne.s32.totalorder %s3358_s28, 0 }
  0x72   : > { %s1818_s5 = sshll.u32 %s2669_s27, 9  ;;  %s199_s15 = scalar_lea.sflag [#allocation7], %s2669_s27 }
  0x73   : > { %s2673_s14 = scalar_lea.vmem [#allocation6], %s1818_s5 }
  0x74   : > { %2387 = dma.done.wait (%p3367_p9), %s199_s15, 8192  }
  0x75   : > { %2389 = vsyncadd (%p3367_p9), %s199_s15, 4294959104  ;;  %p3368_p0 = scmp.ne.s32.totalorder %s3356_s26, 0 }
  0x77   : > { %2391 = dma.done.wait (%p3368_p0), [#allocation10], 3072  }
  0x78   : > { %2393 = vsyncadd (%p3368_p0), [#allocation10], 4294964224  ;;  %s1821_s30 = sshll.u32 %s2669_s27, 8  ;;  %v2214_v0 = vld [vmem:[#allocation9 + $0x40] sm:$0xff]   ;;  %v2216_v2 = vld [vmem:[#allocation9 + $0x48] sm:$0xff]   ;;  %p1838_p2 = scmp.ne.s32.totalorder %s2416_s21, 0 }
  0x79   : > { %v2215_v1 = vld [vmem:[#allocation9] sm:$0xff]   ;;  %1890 = vmatprep.subr.bf16.mxu0 %v2214_v0  ;;  %2074 = vmatprep.subr.bf16.mxu1 %v2214_v0  ;;  %v2217_v3 = vld [vmem:[#allocation9 + $0x8] sm:$0xff]   ;;  %v2218_v4 = vld [vmem:[#allocation9 + $0x50] sm:$0xff]   ;;  %s2814_s26 = scalar_lea.vmem [#allocation12], %s1821_s30  ;;  %p1839_p10 = scmp.ne.s32.totalorder (!%p1838_p2), %s2412_s20, 0 }
  0x7a   : > { %1891 = vmatpush3.bf16.msra.mxu0 %v2215_v1  ;;  %2082 = vmatpush3.bf16.msra.mxu1 %v2215_v1  ;;  %v2219_v5 = vld [vmem:[#allocation9 + $0x10] sm:$0xff]   ;;  %v2220_v6 = vld [vmem:[#allocation9 + $0x58] sm:$0xff]   ;;  %v2222_v8 = vld [vmem:[#allocation9 + $0x60] sm:$0xff]  }
  0x7b   : > { %1892 = vmatprep.subr.bf16.mxu0 %v2216_v2  ;;  %2075 = vmatprep.subr.bf16.mxu1 %v2216_v2  ;;  %v2221_v7 = vld [vmem:[#allocation9 + $0x18] sm:$0xff]   ;;  %v2223_v9 = vld [vmem:[#allocation9 + $0x20] sm:$0xff]   ;;  %v2224_v10 = vld [vmem:[#allocation9 + $0x68] sm:$0xff]  }
  0x7c   : > { %v237_v11 = vld [vmem:[%s2673_s14 + $0x8] sm:$0xff]  ;;  %v239_v12 = vld [vmem:[%s2673_s14 + $0x18] sm:$0xff]  ;;  %v2226_v18 = vld [vmem:[#allocation9 + $0x70] sm:$0xff]  }
  0x7d   : > { %v269_v13 = vld [vmem:[%s2673_s14 + $0x108] sm:$0xff]  ;;  %v301_v14 = vpack.c.bf16 %v239_v12, %v237_v11  ;;  %v271_v15 = vld [vmem:[%s2673_s14 + $0x118] sm:$0xff]  ;;  %v2227_v19 = vld [vmem:[#allocation9 + $0x30] sm:$0xff]  }
  0x7e   : > { %1893 = vmatpush3.bf16.msra.mxu0 %v2217_v3  ;;  %2083 = vmatpush3.bf16.msra.mxu1 %v2217_v3  ;;  %v317_v16 = vpack.c.bf16 %v271_v15, %v269_v13  ;;  %v2225_v17 = vld [vmem:[#allocation9 + $0x28] sm:$0xff]   ;;  %v2228_v20 = vld [vmem:[#allocation9 + $0x78] sm:$0xff]   ;;  %v236_v22 = vld [vmem:[%s2673_s14] sm:$0xff] }
  0x7f   : > { %1894 = vmatprep.subr.bf16.mxu0 %v2218_v4  ;;  %2076 = vmatprep.subr.bf16.mxu1 %v2218_v4  ;;  %v2229_v21 = vld [vmem:[#allocation9 + $0x38] sm:$0xff]   ;;  %v238_v23 = vld [vmem:[%s2673_s14 + $0x10] sm:$0xff]  ;;  %v268_v24 = vld [vmem:[%s2673_s14 + $0x100] sm:$0xff] }
  0x80   : > { %492 = vmatprep.mubr.bf16.mxu0 %v301_v14  ;;  %556 = vmatprep.mubr.bf16.mxu1 %v317_v16  ;;  %v270_v25 = vld [vmem:[%s2673_s14 + $0x110] sm:$0xff]  ;;  %v241_v26 = vld [vmem:[%s2673_s14 + $0x28] sm:$0xff]  ;;  %v243_v27 = vld [vmem:[%s2673_s14 + $0x38] sm:$0xff]  ;;  %v300_v30 = vpack.c.bf16 %v238_v23, %v236_v22 }
  0x81   : > { %v273_v28 = vld [vmem:[%s2673_s14 + $0x128] sm:$0xff]  ;;  %v275_v29 = vld [vmem:[%s2673_s14 + $0x138] sm:$0xff]  ;;  %v316_v31 = vpack.c.bf16 %v270_v25, %v268_v24  ;;  %v303_v32 = vpack.c.bf16 %v243_v27, %v241_v26  ;;  %v240_v34 = vld [vmem:[%s2673_s14 + $0x20] sm:$0xff] }
  0x82   : > { %1895 = vmatpush3.bf16.msra.mxu0 %v2219_v5  ;;  %2084 = vmatpush3.bf16.msra.mxu1 %v2219_v5  ;;  %v319_v33 = vpack.c.bf16 %v275_v29, %v273_v28  ;;  %v242_v35 = vld [vmem:[%s2673_s14 + $0x30] sm:$0xff]  ;;  %v272_v36 = vld [vmem:[%s2673_s14 + $0x120] sm:$0xff]  ;;  %v245_v38 = vld [vmem:[%s2673_s14 + $0x48] sm:$0xff] }
  0x83   : > { %1896 = vmatprep.subr.bf16.mxu0 %v2220_v6  ;;  %2077 = vmatprep.subr.bf16.mxu1 %v2220_v6  ;;  %v274_v37 = vld [vmem:[%s2673_s14 + $0x130] sm:$0xff]  ;;  %v247_v39 = vld [vmem:[%s2673_s14 + $0x58] sm:$0xff]  ;;  %v277_v40 = vld [vmem:[%s2673_s14 + $0x148] sm:$0xff]  ;;  %v302_v42 = vpack.c.bf16 %v242_v35, %v240_v34 }
  0x84   : > { %v279_v41 = vld [vmem:[%s2673_s14 + $0x158] sm:$0xff]  ;;  %v318_v43 = vpack.c.bf16 %v274_v37, %v272_v36  ;;  %v305_v44 = vpack.c.bf16 %v247_v39, %v245_v38  ;;  %v244_v46 = vld [vmem:[%s2673_s14 + $0x40] sm:$0xff]  ;;  %v246_v47 = vld [vmem:[%s2673_s14 + $0x50] sm:$0xff] }
  0x85   : > { %v321_v45 = vpack.c.bf16 %v279_v41, %v277_v40  ;;  %v276_v48 = vld [vmem:[%s2673_s14 + $0x140] sm:$0xff]  ;;  %v278_v49 = vld [vmem:[%s2673_s14 + $0x150] sm:$0xff]  ;;  %v249_v50 = vld [vmem:[%s2673_s14 + $0x68] sm:$0xff]  ;;  %v304_v54 = vpack.c.bf16 %v246_v47, %v244_v46 }
  0x86   : > { %1897 = vmatpush3.bf16.msra.mxu0 %v2221_v7  ;;  %2085 = vmatpush3.bf16.msra.mxu1 %v2221_v7  ;;  %v251_v51 = vld [vmem:[%s2673_s14 + $0x78] sm:$0xff]  ;;  %v281_v52 = vld [vmem:[%s2673_s14 + $0x168] sm:$0xff]  ;;  %v320_v55 = vpack.c.bf16 %v278_v49, %v276_v48  ;;  %v248_v58 = vld [vmem:[%s2673_s14 + $0x60] sm:$0xff] }
  0x87   : > { %1898 = vmatprep.subr.bf16.mxu0 %v2222_v8  ;;  %2078 = vmatprep.subr.bf16.mxu1 %v2222_v8  ;;  %v283_v53 = vld [vmem:[%s2673_s14 + $0x178] sm:$0xff]  ;;  %v307_v56 = vpack.c.bf16 %v251_v51, %v249_v50  ;;  %v250_v59 = vld [vmem:[%s2673_s14 + $0x70] sm:$0xff]  ;;  %v280_v60 = vld [vmem:[%s2673_s14 + $0x160] sm:$0xff] }
  0x88   : > { %v323_v57 = vpack.c.bf16 %v283_v53, %v281_v52  ;;  %v282_v61 = vld [vmem:[%s2673_s14 + $0x170] sm:$0xff]  ;;  %v253_v62 = vld [vmem:[%s2673_s14 + $0x88] sm:$0xff]  ;;  %v255_v63 = vld [vmem:[%s2673_s14 + $0x98] sm:$0xff]  ;;  %v306_v2 = vpack.c.bf16 %v250_v59, %v248_v58 }
  0x89   : > { %v285_v0 = vld [vmem:[%s2673_s14 + $0x188] sm:$0xff]  ;;  %v287_v1 = vld [vmem:[%s2673_s14 + $0x198] sm:$0xff]  ;;  %v322_v3 = vpack.c.bf16 %v282_v61, %v280_v60  ;;  %v309_v4 = vpack.c.bf16 %v255_v63, %v253_v62  ;;  %v252_v6 = vld [vmem:[%s2673_s14 + $0x80] sm:$0xff] }
  0x8a   : > { %1899 = vmatpush3.bf16.msra.mxu0 %v2223_v9  ;;  %2086 = vmatpush3.bf16.msra.mxu1 %v2223_v9  ;;  %v325_v5 = vpack.c.bf16 %v287_v1, %v285_v0  ;;  %v254_v7 = vld [vmem:[%s2673_s14 + $0x90] sm:$0xff]  ;;  %v284_v8 = vld [vmem:[%s2673_s14 + $0x180] sm:$0xff]  ;;  %v259_v11 = vld [vmem:[%s2673_s14 + $0xb8] sm:$0xff] }
  0x8b   : > { %1900 = vmatprep.subr.bf16.mxu0 %v2224_v10  ;;  %2079 = vmatprep.subr.bf16.mxu1 %v2224_v10  ;;  %v286_v9 = vld [vmem:[%s2673_s14 + $0x190] sm:$0xff]  ;;  %v257_v10 = vld [vmem:[%s2673_s14 + $0xa8] sm:$0xff]  ;;  %v291_v13 = vld [vmem:[%s2673_s14 + $0x1b8] sm:$0xff]  ;;  %v308_v14 = vpack.c.bf16 %v254_v7, %v252_v6 }
  0x8c   : > { %v289_v12 = vld [vmem:[%s2673_s14 + $0x1a8] sm:$0xff]  ;;  %v324_v15 = vpack.c.bf16 %v286_v9, %v284_v8  ;;  %v311_v16 = vpack.c.bf16 %v259_v11, %v257_v10  ;;  %v263_v23 = vld [vmem:[%s2673_s14 + $0xd8] sm:$0xff] }
  0x8d   : > { %v261_v22 = vld [vmem:[%s2673_s14 + $0xc8] sm:$0xff]  ;;  %v295_v25 = vld [vmem:[%s2673_s14 + $0x1d8] sm:$0xff] }
  0x8e   : > { %1901 = vmatpush3.bf16.msra.mxu0 %v2225_v17  ;;  %2087 = vmatpush3.bf16.msra.mxu1 %v2225_v17  ;;  %v327_v17 = vpack.c.bf16 %v291_v13, %v289_v12  ;;  %v293_v24 = vld [vmem:[%s2673_s14 + $0x1c8] sm:$0xff]  ;;  %v313_v28 = vpack.c.bf16 %v263_v23, %v261_v22  ;;  %v267_v35 = vld [vmem:[%s2673_s14 + $0xf8] sm:$0xff] }
  0x8f   : > { %1902 = vmatprep.subr.bf16.mxu0 %v2226_v18  ;;  %2080 = vmatprep.subr.bf16.mxu1 %v2226_v18  ;;  %v256_v18 = vld [vmem:[%s2673_s14 + $0xa0] sm:$0xff]  ;;  %v329_v29 = vpack.c.bf16 %v295_v25, %v293_v24  ;;  %v265_v34 = vld [vmem:[%s2673_s14 + $0xe8] sm:$0xff]  ;;  %v299_v37 = vld [vmem:[%s2673_s14 + $0x1f8] sm:$0xff] }
  0x90   : > { %v297_v36 = vld [vmem:[%s2673_s14 + $0x1e8] sm:$0xff]  ;;  %v315_v40 = vpack.c.bf16 %v267_v35, %v265_v34 }
  0x91   : > { %v331_v41 = vpack.c.bf16 %v299_v37, %v297_v36 }
  0x92   : > { %1903 = vmatpush3.bf16.msra.mxu0 %v2227_v19  ;;  %2088 = vmatpush3.bf16.msra.mxu1 %v2227_v19  ;;  %v258_v19 = vld [vmem:[%s2673_s14 + $0xb0] sm:$0xff] }
  0x93   : > { %1904 = vmatprep.subr.bf16.mxu0 %v2228_v20  ;;  %2081 = vmatprep.subr.bf16.mxu1 %v2228_v20  ;;  %v288_v20 = vld [vmem:[%s2673_s14 + $0x1a0] sm:$0xff]  ;;  %v310_v26 = vpack.c.bf16 %v258_v19, %v256_v18 }
  0x96   : > { %1905 = vmatpush3.bf16.msra.mxu0 %v2229_v21  ;;  %2089 = vmatpush3.bf16.msra.mxu1 %v2229_v21  ;;  %v290_v21 = vld [vmem:[%s2673_s14 + $0x1b0] sm:$0xff] }
  0x97   : > { %v326_v27 = vpack.c.bf16 %v290_v21, %v288_v20 }
  0x99   : > { %493 = vmatmul.mubr.bf16.vlgmr.msra.gmra.mrb[0].mxu0 %v300_v30  ;;  %557 = vmatmul.mubr.bf16.vlgmr.msra.gmra.mrb[0].mxu1 %v316_v31  ;;  %v260_v30 = vld [vmem:[%s2673_s14 + $0xc0] sm:$0xff]  ;;  %v262_v31 = vld [vmem:[%s2673_s14 + $0xd0] sm:$0xff] }
  0x9a   : > { %500 = vmatprep.mubr.bf16.mxu0 %v303_v32  ;;  %564 = vmatprep.mubr.bf16.mxu1 %v319_v33  ;;  %v292_v32 = vld [vmem:[%s2673_s14 + $0x1c0] sm:$0xff]  ;;  %v294_v33 = vld [vmem:[%s2673_s14 + $0x1d0] sm:$0xff]  ;;  %v312_v38 = vpack.c.bf16 %v262_v31, %v260_v30 }
  0x9b   : > { %v328_v39 = vpack.c.bf16 %v294_v33, %v292_v32 }
  0xa1   : > { %501 = vmatmul.mubr.bf16.gmra.mrb[4].mxu0 %v302_v42  ;;  %565 = vmatmul.mubr.bf16.gmra.mrb[4].mxu1 %v318_v43  ;;  %v264_v42 = vld [vmem:[%s2673_s14 + $0xe0] sm:$0xff]  ;;  %v266_v43 = vld [vmem:[%s2673_s14 + $0xf0] sm:$0xff] }
  0xa2   : > { %508 = vmatprep.mubr.bf16.mxu0 %v305_v44  ;;  %572 = vmatprep.mubr.bf16.mxu1 %v321_v45  ;;  %v296_v44 = vld [vmem:[%s2673_s14 + $0x1e0] sm:$0xff]  ;;  %v298_v45 = vld [vmem:[%s2673_s14 + $0x1f0] sm:$0xff]  ;;  %v314_v46 = vpack.c.bf16 %v266_v43, %v264_v42 }
  0xa3   : > { %v330_v47 = vpack.c.bf16 %v298_v45, %v296_v44 }
  0xa9   : > { %509 = vmatmul.mubr.bf16.gmra.mrb[8].mxu0 %v304_v54  ;;  %573 = vmatmul.mubr.bf16.gmra.mrb[8].mxu1 %v320_v55 }
  0xaa   : > { %516 = vmatprep.mubr.bf16.mxu0 %v307_v56  ;;  %580 = vmatprep.mubr.bf16.mxu1 %v323_v57 }
  0xb1   : > { %517 = vmatmul.mubr.bf16.gmra.mrb[12].mxu0 %v306_v2  ;;  %581 = vmatmul.mubr.bf16.gmra.mrb[12].mxu1 %v322_v3 }
  0xb2   : > { %524 = vmatprep.mubr.bf16.mxu0 %v309_v4  ;;  %588 = vmatprep.mubr.bf16.mxu1 %v325_v5 }
  0xb9   : > { %525 = vmatmul.mubr.bf16.gmra.mrb[16].mxu0 %v308_v14  ;;  %589 = vmatmul.mubr.bf16.gmra.mrb[16].mxu1 %v324_v15 }
  0xba   : > { %532 = vmatprep.mubr.bf16.mxu0 %v311_v16  ;;  %596 = vmatprep.mubr.bf16.mxu1 %v327_v17 }
  0xc1   : > { %533 = vmatmul.mubr.bf16.gmra.mrb[20].mxu0 %v310_v26  ;;  %597 = vmatmul.mubr.bf16.gmra.mrb[20].mxu1 %v326_v27 }
  0xc2   : > { %540 = vmatprep.mubr.bf16.mxu0 %v313_v28  ;;  %604 = vmatprep.mubr.bf16.mxu1 %v329_v29 }
  0xc9   : > { %541 = vmatmul.mubr.bf16.gmra.mrb[24].mxu0 %v312_v38  ;;  %605 = vmatmul.mubr.bf16.gmra.mrb[24].mxu1 %v328_v39 }
  0xca   : > { %548 = vmatprep.mubr.bf16.mxu0 %v315_v40  ;;  %612 = vmatprep.mubr.bf16.mxu1 %v331_v41 }
  0xd1   : > { %549 = vmatmul.mubr.bf16.gmra.mrb[28].mxu0 %v314_v46  ;;  %613 = vmatmul.mubr.bf16.gmra.mrb[28].mxu1 %v330_v47 }
 0x16c   : > { %v1906_v48 = vpop.f32.mrb[0].mxu0  ;;  %v1954_v49 = vpop.f32.mrb[0].mxu1 }
 0x16d   : > { %v1907_v50 = vpop.f32.mrb[1].mxu0  ;;  %v1955_v51 = vpop.f32.mrb[1].mxu1 }
 0x16e   : > { %v2748_v52 = vadd.f32 %v1907_v50, %v1906_v48  ;;  %v2750_v53 = vadd.f32 %v1955_v51, %v1954_v49  ;;  %v1909_v54 = vpop.f32.mrb[2].mxu0  ;;  %v1957_v55 = vpop.f32.mrb[2].mxu1 }
 0x16f   : > { %v1910_v56 = vpop.f32.mrb[3].mxu0  ;;  %v1958_v57 = vpop.f32.mrb[3].mxu1 }
 0x170   : > { %v2752_v58 = vadd.f32 %v1910_v56, %v1909_v54  ;;  %v2754_v59 = vadd.f32 %v1958_v57, %v1957_v55 }
 0x174   : > { %v1912_v60 = vpop.f32.mrb[4].mxu0  ;;  %v1960_v61 = vpop.f32.mrb[4].mxu1 }
 0x175   : > { %v1913_v62 = vpop.f32.mrb[5].mxu0  ;;  %v1961_v63 = vpop.f32.mrb[5].mxu1 }
 0x176   : > { %v2756_v0 = vadd.f32 %v1913_v62, %v1912_v60  ;;  %v2758_v1 = vadd.f32 %v1961_v63, %v1960_v61  ;;  %v1915_v2 = vpop.f32.mrb[6].mxu0  ;;  %v1963_v3 = vpop.f32.mrb[6].mxu1 }
 0x177   : > { %v1916_v4 = vpop.f32.mrb[7].mxu0  ;;  %v1964_v5 = vpop.f32.mrb[7].mxu1 }
 0x178   : > { %v2760_v6 = vadd.f32 %v1916_v4, %v1915_v2  ;;  %v2762_v7 = vadd.f32 %v1964_v5, %v1963_v3 }
 0x17c   : > { %v1918_v8 = vpop.f32.mrb[8].mxu0  ;;  %v1966_v9 = vpop.f32.mrb[8].mxu1 }
 0x17d   : > { %v1919_v10 = vpop.f32.mrb[9].mxu0  ;;  %v1967_v11 = vpop.f32.mrb[9].mxu1 }
 0x17e   : > { %v2764_v12 = vadd.f32 %v1919_v10, %v1918_v8  ;;  %v2766_v13 = vadd.f32 %v1967_v11, %v1966_v9  ;;  %v1921_v14 = vpop.f32.mrb[10].mxu0  ;;  %v1969_v15 = vpop.f32.mrb[10].mxu1 }
 0x17f   : > { %v1922_v16 = vpop.f32.mrb[11].mxu0  ;;  %v1970_v17 = vpop.f32.mrb[11].mxu1 }
 0x180   : > { %v2768_v18 = vadd.f32 %v1922_v16, %v1921_v14  ;;  %v2770_v19 = vadd.f32 %v1970_v17, %v1969_v15 }
 0x184   : > { %v1924_v20 = vpop.f32.mrb[12].mxu0  ;;  %v1972_v21 = vpop.f32.mrb[12].mxu1 }
 0x185   : > { %v1925_v22 = vpop.f32.mrb[13].mxu0  ;;  %v1973_v23 = vpop.f32.mrb[13].mxu1 }
 0x186   : > { %v2772_v24 = vadd.f32 %v1925_v22, %v1924_v20  ;;  %v2774_v25 = vadd.f32 %v1973_v23, %v1972_v21  ;;  %v1927_v26 = vpop.f32.mrb[14].mxu0  ;;  %v1975_v27 = vpop.f32.mrb[14].mxu1 }
 0x187   : > { %v1928_v28 = vpop.f32.mrb[15].mxu0  ;;  %v1976_v29 = vpop.f32.mrb[15].mxu1 }
 0x188   : > { %v2776_v30 = vadd.f32 %v1928_v28, %v1927_v26  ;;  %v2778_v31 = vadd.f32 %v1976_v29, %v1975_v27 }
 0x18c   : > { %v1930_v32 = vpop.f32.mrb[16].mxu0  ;;  %v1978_v33 = vpop.f32.mrb[16].mxu1 }
 0x18d   : > { %v1931_v34 = vpop.f32.mrb[17].mxu0  ;;  %v1979_v35 = vpop.f32.mrb[17].mxu1 }
 0x18e   : > { %v2780_v36 = vadd.f32 %v1931_v34, %v1930_v32  ;;  %v2782_v37 = vadd.f32 %v1979_v35, %v1978_v33  ;;  %v1933_v38 = vpop.f32.mrb[18].mxu0  ;;  %v1981_v39 = vpop.f32.mrb[18].mxu1 }
 0x18f   : > { %v1934_v40 = vpop.f32.mrb[19].mxu0  ;;  %v1982_v41 = vpop.f32.mrb[19].mxu1 }
 0x190   : > { %v2784_v42 = vadd.f32 %v1934_v40, %v1933_v38  ;;  %v2786_v43 = vadd.f32 %v1982_v41, %v1981_v39 }
 0x194   : > { %v1936_v44 = vpop.f32.mrb[20].mxu0  ;;  %v1984_v45 = vpop.f32.mrb[20].mxu1 }
 0x195   : > { %v1937_v46 = vpop.f32.mrb[21].mxu0  ;;  %v1985_v47 = vpop.f32.mrb[21].mxu1 }
 0x196   : > { %v2788_v48 = vadd.f32 %v1937_v46, %v1936_v44  ;;  %v2790_v49 = vadd.f32 %v1985_v47, %v1984_v45  ;;  %v1939_v50 = vpop.f32.mrb[22].mxu0  ;;  %v1987_v51 = vpop.f32.mrb[22].mxu1 }
 0x197   : > { %v1940_v54 = vpop.f32.mrb[23].mxu0  ;;  %v1988_v55 = vpop.f32.mrb[23].mxu1 }
 0x198   : > { %v2792_v56 = vadd.f32 %v1940_v54, %v1939_v50  ;;  %v2794_v57 = vadd.f32 %v1988_v55, %v1987_v51 }
 0x19c   : > { %v1942_v60 = vpop.f32.mrb[24].mxu0  ;;  %v1990_v61 = vpop.f32.mrb[24].mxu1 }
 0x19d   : > { %v1943_v62 = vpop.f32.mrb[25].mxu0  ;;  %v1991_v63 = vpop.f32.mrb[25].mxu1 }
 0x19e   : > { %v2796_v2 = vadd.f32 %v1943_v62, %v1942_v60  ;;  %v2798_v3 = vadd.f32 %v1991_v63, %v1990_v61  ;;  %v1945_v4 = vpop.f32.mrb[26].mxu0  ;;  %v1993_v5 = vpop.f32.mrb[26].mxu1 }
 0x19f   : > { %v1946_v8 = vpop.f32.mrb[27].mxu0  ;;  %v1994_v9 = vpop.f32.mrb[27].mxu1 }
 0x1a0   : > { %v2800_v10 = vadd.f32 %v1946_v8, %v1945_v4  ;;  %v2802_v11 = vadd.f32 %v1994_v9, %v1993_v5 }
 0x1a4   : > { %v1948_v14 = vpop.f32.mrb[28].mxu0  ;;  %v1996_v15 = vpop.f32.mrb[28].mxu1  ;;  %624 = sbr.rel (%p1838_p2) target bundleno = 513 (0x201), region = 48 }
 0x1a5   : > { %v1949_v16 = vpop.f32.mrb[29].mxu0  ;;  %v1997_v17 = vpop.f32.mrb[29].mxu1 }
 0x1a6   : > { %v2804_v20 = vadd.f32 %v1949_v16, %v1948_v14  ;;  %v2806_v21 = vadd.f32 %v1997_v17, %v1996_v15  ;;  %v1951_v22 = vpop.f32.mrb[30].mxu0  ;;  %v1999_v23 = vpop.f32.mrb[30].mxu1 }
 0x1a7   : > { %v1952_v26 = vpop.f32.mrb[31].mxu0  ;;  %v2000_v27 = vpop.f32.mrb[31].mxu1 }
 0x1a8   : > { %3369 = vst [vmem:[#allocation16_spill] sm:$0xff] %v2806_v21  ;;  %v2808_v28 = vadd.f32 %v1952_v26, %v1951_v22  ;;  %v2810_v29 = vadd.f32 %v2000_v27, %v1999_v23 }
 0x1aa   : > { %3370 = vst [vmem:[#allocation17_spill] sm:$0xff] %v2810_v29 }
 0x1ab   : > { %628 = sbr.rel (%p1839_p10) target bundleno = 434 (0x1b2), region = 52  ;;  %v2437_v32 = vmov (!%p1839_p10), 0.0  }
 0x1ac   : > { %629 = vst [vmem:[#allocation2] sm:$0x1] (!%p1839_p10), %v2437_v32  ;;  %630 = vst [vmem:[#allocation3] sm:$0x1] (!%p1839_p10), %v2437_v32 }
 0x1b2 PF: > { %v632_v33 = vadd.f32 %v2752_v58, %v2748_v52  ;;  %v672_v38 = vmul.f32 %v2748_v52, %v2748_v52  ;;  %v673_v39 = vmul.f32 %v2752_v58, %v2752_v58  ;;  %v674_v41 = vmul.f32 %v2756_v0, %v2756_v0 }
 0x1b3   : > { %v675_v45 = vmul.f32 %v2760_v6, %v2760_v6  ;;  %v2438_v50 = vmov 0.0   ;;  %v676_v51 = vmul.f32 %v2764_v12, %v2764_v12  ;;  %v677_v60 = vmul.f32 %v2768_v18, %v2768_v18 }
 0x1b4   : > { %v633_v34 = vadd.f32 %v2756_v0, %v632_v33  ;;  %v704_v46 = vadd.f32 %v673_v39, %v672_v38  ;;  %743 = vst [vmem:[%s2814_s26] sm:$0xff] %v2438_v50  ;;  %744 = vst [vmem:[%s2814_s26 + $0x8] sm:$0xff] %v2438_v50  ;;  %v678_v63 = vmul.f32 %v2772_v24, %v2772_v24 }
 0x1b5   : > { %745 = vst [vmem:[%s2814_s26 + $0x10] sm:$0xff] %v2438_v50  ;;  %746 = vst [vmem:[%s2814_s26 + $0x18] sm:$0xff] %v2438_v50  ;;  %v679_v8 = vmul.f32 %v2776_v30, %v2776_v30  ;;  %v680_v15 = vmul.f32 %v2780_v36, %v2780_v36  ;;  %v681_v22 = vmul.f32 %v2784_v42, %v2784_v42 }
 0x1b6   : > { %v634_v35 = vadd.f32 %v2760_v6, %v633_v34  ;;  %747 = vst [vmem:[%s2814_s26 + $0x20] sm:$0xff] %v2438_v50  ;;  %748 = vst [vmem:[%s2814_s26 + $0x28] sm:$0xff] %v2438_v50  ;;  %v705_v54 = vadd.f32 %v704_v46, %v674_v41  ;;  %v682_v27 = vmul.f32 %v2788_v48, %v2788_v48 }
 0x1b7   : > { %749 = vst [vmem:[%s2814_s26 + $0x30] sm:$0xff] %v2438_v50  ;;  %750 = vst [vmem:[%s2814_s26 + $0x38] sm:$0xff] %v2438_v50  ;;  %v683_v34 = vmul.f32 %v2792_v56, %v2792_v56  ;;  %v684_v39 = vmul.f32 %v2796_v2, %v2796_v2 }
 0x1b8   : > { %v635_v40 = vadd.f32 %v2764_v12, %v634_v35  ;;  %751 = vst [vmem:[%s2814_s26 + $0x40] sm:$0xff] %v2438_v50  ;;  %752 = vst [vmem:[%s2814_s26 + $0x48] sm:$0xff] %v2438_v50  ;;  %v706_v61 = vadd.f32 %v705_v54, %v675_v45  ;;  %v687_v54 = vmul.f32 %v2808_v28, %v2808_v28 }
 0x1b9   : > { %753 = vst [vmem:[%s2814_s26 + $0x50] sm:$0xff] %v2438_v50  ;;  %754 = vst [vmem:[%s2814_s26 + $0x58] sm:$0xff] %v2438_v50 }
 0x1ba   : > { %v636_v44 = vadd.f32 %v2768_v18, %v635_v40  ;;  %755 = vst [vmem:[%s2814_s26 + $0x60] sm:$0xff] %v2438_v50  ;;  %756 = vst [vmem:[%s2814_s26 + $0x68] sm:$0xff] %v2438_v50  ;;  %v707_v4 = vadd.f32 %v706_v61, %v676_v51  ;;  %v688_v61 = vmul.f32 %v2750_v53, %v2750_v53 }
 0x1bb   : > { %757 = vst [vmem:[%s2814_s26 + $0x70] sm:$0xff] %v2438_v50  ;;  %758 = vst [vmem:[%s2814_s26 + $0x78] sm:$0xff] %v2438_v50 }
 0x1bc   : > { %v637_v47 = vadd.f32 %v2772_v24, %v636_v44  ;;  %759 = vst [vmem:[%s2814_s26 + $0x80] sm:$0xff] %v2438_v50  ;;  %760 = vst [vmem:[%s2814_s26 + $0x88] sm:$0xff] %v2438_v50  ;;  %v708_v9 = vadd.f32 %v707_v4, %v677_v60  ;;  %v685_v44 = vmul.f32 %v2800_v10, %v2800_v10 }
 0x1bd   : > { %761 = vst [vmem:[%s2814_s26 + $0x90] sm:$0xff] %v2438_v50  ;;  %762 = vst [vmem:[%s2814_s26 + $0x98] sm:$0xff] %v2438_v50  ;;  %v689_v4 = vmul.f32 %v2754_v59, %v2754_v59 }
 0x1be   : > { %763 = vst [vmem:[%s2814_s26 + $0xa0] sm:$0xff] %v2438_v50  ;;  %764 = vst [vmem:[%s2814_s26 + $0xa8] sm:$0xff] %v2438_v50  ;;  %v638_v55 = vadd.f32 %v2776_v30, %v637_v47  ;;  %v709_v16 = vadd.f32 %v708_v9, %v678_v63  ;;  %v686_v47 = vmul.f32 %v2804_v20, %v2804_v20 }
 0x1bf   : > { %765 = vst [vmem:[%s2814_s26 + $0xb0] sm:$0xff] %v2438_v50  ;;  %766 = vst [vmem:[%s2814_s26 + $0xb8] sm:$0xff] %v2438_v50  ;;  %v690_v9 = vmul.f32 %v2758_v1, %v2758_v1 }
 0x1c0   : > { %767 = vst [vmem:[%s2814_s26 + $0xc0] sm:$0xff] %v2438_v50  ;;  %768 = vst [vmem:[%s2814_s26 + $0xc8] sm:$0xff] %v2438_v50  ;;  %v639_v62 = vadd.f32 %v2780_v36, %v638_v55  ;;  %v710_v23 = vadd.f32 %v709_v16, %v679_v8  ;;  %v691_v16 = vmul.f32 %v2762_v7, %v2762_v7 }
 0x1c1   : > { %769 = vst [vmem:[%s2814_s26 + $0xd0] sm:$0xff] %v2438_v50  ;;  %770 = vst [vmem:[%s2814_s26 + $0xd8] sm:$0xff] %v2438_v50 }
 0x1c2   : > { %771 = vst [vmem:[%s2814_s26 + $0xe0] sm:$0xff] %v2438_v50  ;;  %772 = vst [vmem:[%s2814_s26 + $0xe8] sm:$0xff] %v2438_v50  ;;  %v640_v5 = vadd.f32 %v2784_v42, %v639_v62  ;;  %v711_v32 = vadd.f32 %v710_v23, %v680_v15  ;;  %v692_v23 = vmul.f32 %v2766_v13, %v2766_v13 }
 0x1c3   : > { %773 = vst [vmem:[%s2814_s26 + $0xf0] sm:$0xff] %v2438_v50  ;;  %774 = vst [vmem:[%s2814_s26 + $0xf8] sm:$0xff] %v2438_v50 }
 0x1c4   : > { %v641_v14 = vadd.f32 %v2788_v48, %v640_v5  ;;  %v712_v35 = vadd.f32 %v711_v32, %v681_v22  ;;  %v693_v32 = vmul.f32 %v2770_v19, %v2770_v19 }
 0x1c6   : > { %v642_v17 = vadd.f32 %v2792_v56, %v641_v14  ;;  %v713_v40 = vadd.f32 %v712_v35, %v682_v27  ;;  %v694_v35 = vmul.f32 %v2774_v25, %v2774_v25 }
 0x1c8   : > { %v643_v26 = vadd.f32 %v2796_v2, %v642_v17  ;;  %v714_v45 = vadd.f32 %v713_v40, %v683_v34  ;;  %v695_v40 = vmul.f32 %v2778_v31, %v2778_v31 }
 0x1ca   : > { %v644_v33 = vadd.f32 %v2800_v10, %v643_v26  ;;  %v715_v50 = vadd.f32 %v714_v45, %v684_v39  ;;  %v696_v45 = vmul.f32 %v2782_v37, %v2782_v37 }
 0x1cc   : > { %v645_v38 = vadd.f32 %v2804_v20, %v644_v33  ;;  %v716_v55 = vadd.f32 %v715_v50, %v685_v44  ;;  %v697_v50 = vmul.f32 %v2786_v43, %v2786_v43 }
 0x1ce   : > { %v646_v41 = vadd.f32 %v2808_v28, %v645_v38  ;;  %v717_v62 = vadd.f32 %v716_v55, %v686_v47  ;;  %v698_v55 = vmul.f32 %v2790_v49, %v2790_v49 }
 0x1d0   : > { %v647_v46 = vadd.f32 %v2750_v53, %v646_v41  ;;  %v718_v5 = vadd.f32 %v717_v62, %v687_v54  ;;  %v699_v62 = vmul.f32 %v2794_v57, %v2794_v57 }
 0x1d2   : > { %v648_v51 = vadd.f32 %v2754_v59, %v647_v46  ;;  %v719_v14 = vadd.f32 %v718_v5, %v688_v61  ;;  %v700_v5 = vmul.f32 %v2798_v3, %v2798_v3 }
 0x1d4   : > { %v649_v60 = vadd.f32 %v2758_v1, %v648_v51  ;;  %v720_v17 = vadd.f32 %v719_v14, %v689_v4  ;;  %v701_v14 = vmul.f32 %v2802_v11, %v2802_v11 }
 0x1d6   : > { %v650_v63 = vadd.f32 %v2762_v7, %v649_v60  ;;  %v721_v26 = vadd.f32 %v720_v17, %v690_v9  ;;  %v702_v17 = vmul.f32 %v2806_v21, %v2806_v21 }
 0x1d8   : > { %v651_v8 = vadd.f32 %v2766_v13, %v650_v63  ;;  %v722_v33 = vadd.f32 %v721_v26, %v691_v16  ;;  %v703_v26 = vmul.f32 %v2810_v29, %v2810_v29 }
 0x1da   : > { %v652_v15 = vadd.f32 %v2770_v19, %v651_v8  ;;  %v723_v38 = vadd.f32 %v722_v33, %v692_v23 }
 0x1dc   : > { %v653_v22 = vadd.f32 %v2774_v25, %v652_v15  ;;  %v724_v41 = vadd.f32 %v723_v38, %v693_v32 }
 0x1de   : > { %v654_v27 = vadd.f32 %v2778_v31, %v653_v22  ;;  %v725_v46 = vadd.f32 %v724_v41, %v694_v35 }
 0x1e0   : > { %v655_v34 = vadd.f32 %v2782_v37, %v654_v27  ;;  %v726_v51 = vadd.f32 %v725_v46, %v695_v40 }
 0x1e2   : > { %v656_v39 = vadd.f32 %v2786_v43, %v655_v34  ;;  %v727_v60 = vadd.f32 %v726_v51, %v696_v45  ;;  %v671_v51 = vld [vmem:[#allocation3] sm:$0x1] }
 0x1e4   : > { %v657_v44 = vadd.f32 %v2790_v49, %v656_v39  ;;  %v728_v63 = vadd.f32 %v727_v60, %v697_v50  ;;  %v631_v39 = vld [vmem:[#allocation2] sm:$0x1] }
 0x1e6   : > { %v658_v47 = vadd.f32 %v2794_v57, %v657_v44  ;;  %v729_v8 = vadd.f32 %v728_v63, %v698_v55 }
 0x1e8   : > { %v659_v54 = vadd.f32 %v2798_v3, %v658_v47  ;;  %v730_v15 = vadd.f32 %v729_v8, %v699_v62 }
 0x1ea   : > { %v660_v61 = vadd.f32 %v2802_v11, %v659_v54  ;;  %v731_v22 = vadd.f32 %v730_v15, %v700_v5 }
 0x1ec   : > { %v661_v4 = vadd.f32 %v2806_v21, %v660_v61  ;;  %v732_v27 = vadd.f32 %v731_v22, %v701_v14 }
 0x1ee   : > { %v662_v9 = vadd.f32 %v2810_v29, %v661_v4  ;;  %v733_v33 = vadd.f32 %v732_v27, %v702_v17 }
 0x1f0   : > { %v663_v16 = vrot.slane %v662_v9, 4  ;;  %v734_v35 = vadd.f32 %v733_v33, %v703_v26 }
 0x1f2   : > { %v664_v23 = vadd.f32 %v663_v16, %v662_v9  ;;  %v735_v40 = vrot.slane %v734_v35, 4 }
 0x1f4   : > { %v665_v32 = vrot.slane %v664_v23, 2  ;;  %v736_v44 = vadd.f32 %v735_v40, %v734_v35 }
 0x1f6   : > { %v666_v34 = vadd.f32 %v665_v32, %v664_v23  ;;  %v737_v46 = vrot.slane %v736_v44, 2 }
 0x1f8   : > { %v667_v38 = vrot.slane %v666_v34, 1  ;;  %v738_v47 = vadd.f32 %v737_v46, %v736_v44 }
 0x1fa   : > { %v668_v41 = vadd.f32 %v667_v38, %v666_v34  ;;  %v739_v50 = vrot.slane %v738_v47, 1 }
 0x1fc   : > { %v669_v45 = vadd.f32 %v668_v41, %v631_v39  ;;  %v740_v54 = vadd.f32 %v739_v50, %v738_v47 }
 0x1fe   : > { %670 = vst [vmem:[#allocation2] sm:$0x1] %v669_v45  ;;  %v741_v55 = vadd.f32 %v740_v54, %v671_v51 }
 0x200   : > { %742 = vst [vmem:[#allocation3] sm:$0x1] %v741_v55 }
 0x201 PF: > { %p1840_p4 = scmp.ne.s32.totalorder %s2416_s21, 1 }
 0x202   : > { %v2230_v60 = vld [vmem:[#allocation11] sm:$0xff] (!%p1840_p4)   ;;  %v790_v61 = vlaneseq (!%p1840_p4)  ;;  %s1841_s28 = sshll.u32 (!%p1840_p4), %s2412_s20, 8  ;;  %v2231_v62 = vld [vmem:[#allocation11 + $0x8] sm:$0xff] (!%p1840_p4)   ;;  %v2232_v5 = vld [vmem:[#allocation11 + $0x10] sm:$0xff] (!%p1840_p4)   ;;  %s2960_s21 = sld [smem:[#allocation5]] (!%p1840_p4) }
 0x203   : > { %778 = sbr.rel (%p1840_p4) target bundleno = 895 (0x37f), region = 56  ;;  %v2948_v63 = vstv (!%p1840_p4), %s1841_s28  ;;  %2026 = vmatprep.subr.bf16.mxu0 (!%p1840_p4), %v2230_v60  ;;  %2090 = vmatprep.subr.bf16.mxu1 (!%p1840_p4), %v2230_v60  ;;  %v2233_v14 = vld [vmem:[#allocation11 + $0x18] sm:$0xff] (!%p1840_p4)   ;;  %v2234_v45 = vld [vmem:[#allocation11 + $0x20] sm:$0xff] (!%p1840_p4)  }
 0x204   : > { %v2950_v4 = vshrl.u32 (!%p1840_p4), %v790_v61, 7  ;;  %2027 = vmatpush3.bf16.msra.mxu0 (!%p1840_p4), %v2230_v60  ;;  %2098 = vmatpush3.bf16.msra.mxu1 (!%p1840_p4), %v2230_v60  ;;  %v2956_v16 = vand.u32 (!%p1840_p4), 127, %v790_v61 }
 0x205   : > { %2028 = vmatprep.subr.bf16.mxu0 (!%p1840_p4), %v2231_v62  ;;  %2091 = vmatprep.subr.bf16.mxu1 (!%p1840_p4), %v2231_v62  ;;  %v779_v26 = vld [vmem:[#allocation2] sm:$0x1] (!%p1840_p4) }
 0x206   : > { %v903_v8 = vadd.s32 (!%p1840_p4), %v2948_v63, %v2950_v4  ;;  %v869_v9 = vadd.s32 (!%p1840_p4), 8, %v2950_v4  ;;  %v3353_v15 = vsub.s32 (!%p1840_p4), 0, %v2950_v4  ;;  %v884_v23 = vadd.s32 (!%p1840_p4), 128, %v2950_v4 }
 0x207   : > { %v781_v27 = vld [vmem:[#allocation3] sm:$0x1] (!%p1840_p4)  ;;  %v780_v32 = vmul.f32 (!%p1840_p4), 0.001953125, %v779_v26  ;;  %v885_v35 = vadd.s32 (!%p1840_p4), 136, %v2950_v4  ;;  %v870_v39 = vadd.s32 (!%p1840_p4), 16, %v2950_v4  ;;  %v871_v40 = vadd.s32 (!%p1840_p4), 24, %v2950_v4 }
 0x208   : > { %2029 = vmatpush3.bf16.msra.mxu0 (!%p1840_p4), %v2231_v62  ;;  %2099 = vmatpush3.bf16.msra.mxu1 (!%p1840_p4), %v2231_v62  ;;  %v904_v17 = vadd.s32 (!%p1840_p4), %v2948_v63, %v869_v9  ;;  %v935_v22 = vmul.u32 (!%p1840_p4), 128, %v903_v8  ;;  %v782_v33 = vmul.f32 (!%p1840_p4), 0.001953125, %v781_v27  ;;  %v919_v38 = vadd.s32 (!%p1840_p4), %v2948_v63, %v884_v23  ;;  %s999_s8 = smul.u32 (!%p1840_p4), 2654435769, %s2960_s21 }
 0x209   : > { %2030 = vmatprep.subr.bf16.mxu0 (!%p1840_p4), %v2232_v5  ;;  %2092 = vmatprep.subr.bf16.mxu1 (!%p1840_p4), %v2232_v5  ;;  %v783_v41 = vmul.f32 (!%p1840_p4), %v780_v32, %v780_v32  ;;  %v2968_v44 = vrot.slane (!%p1840_p4), %v780_v32, %v3353_v15  ;;  %v920_v46 = vadd.s32 (!%p1840_p4), %v2948_v63, %v885_v35  ;;  %v887_v8 = vadd.s32 (!%p1840_p4), 152, %v2950_v4 }
 0x20a   : > { %v936_v34 = vmul.u32 128, %v904_v17  ;;  %v951_v47 = vmul.u32 128, %v919_v38  ;;  %v905_v50 = vadd.s32 %v2948_v63, %v870_v39  ;;  %v906_v51 = vadd.s32 %v2948_v63, %v871_v40 }
 0x20b   : > { %v784_v54 = vsub.f32 %v782_v33, %v783_v41  ;;  %v967_v55 = vadd.s32 %v935_v22, %v2956_v16  ;;  %v952_v61 = vmul.u32 128, %v920_v46  ;;  %v2235_v22 = vld [vmem:[#allocation11 + $0x28] sm:$0xff]   ;;  %v2983_v32 = vstv %s999_s8 }
 0x20c   : > { %2031 = vmatpush3.bf16.msra.mxu0 %v2232_v5  ;;  %2100 = vmatpush3.bf16.msra.mxu1 %v2232_v5  ;;  %v968_v60 = vadd.s32 %v936_v34, %v2956_v16  ;;  %v983_v62 = vadd.s32 %v951_v47, %v2956_v16  ;;  %v886_v5 = vadd.s32 144, %v2950_v4  ;;  %v937_v23 = vmul.u32 128, %v905_v50 }
 0x20d   : > { %2032 = vmatprep.subr.bf16.mxu0 %v2233_v14  ;;  %2093 = vmatprep.subr.bf16.mxu1 %v2233_v14  ;;  %v785_v9 = vmax.f32 %v784_v54, 0.0  ;;  %v938_v26 = vmul.u32 128, %v906_v51  ;;  %v984_v34 = vadd.s32 %v952_v61, %v2956_v16  ;;  %v1001_v35 = vxor.u32 %v2983_v32, %v967_v55  ;;  %v2236_v55 = vld [vmem:[#allocation11 + $0x30] sm:$0xff]  }
 0x20e   : > { %v1002_v38 = vxor.u32 %v2983_v32, %v968_v60  ;;  %v1017_v39 = vxor.u32 %v2983_v32, %v983_v62  ;;  %v969_v41 = vadd.s32 %v937_v23, %v2956_v16  ;;  %v921_v47 = vadd.s32 %v2948_v63, %v886_v5 }
 0x20f   : > { %v1018_v40 = vxor.u32 %v2983_v32, %v984_v34  ;;  %v970_v46 = vadd.s32 %v938_v26, %v2956_v16  ;;  %v1033_v50 = vshrl.u32 %v1001_v35, 16  ;;  %v812_v29 = vsub.f32 %v2754_v59, %v2968_v44 }
 0x210   : > { %2033 = vmatpush3.bf16.msra.mxu0 %v2233_v14  ;;  %2101 = vmatpush3.bf16.msra.mxu1 %v2233_v14  ;;  %v786_v14 = vadd.f32 1e-05, %v785_v9  ;;  %v1034_v51 = vshrl.u32 %v1002_v38, 16  ;;  %v1049_v54 = vshrl.u32 %v1017_v39, 16  ;;  %v1003_v61 = vxor.u32 %v2983_v32, %v969_v41 }
 0x211   : > { %2034 = vmatprep.subr.bf16.mxu0 %v2234_v45  ;;  %2094 = vmatprep.subr.bf16.mxu1 %v2234_v45  ;;  %v1050_v60 = vshrl.u32 %v1018_v40, 16  ;;  %v1004_v62 = vxor.u32 %v2983_v32, %v970_v46  ;;  %v922_v9 = vadd.s32 %v2948_v63, %v887_v8  ;;  %v1065_v23 = vxor.u32 %v1033_v50, %v1001_v35  ;;  %v2237_v8 = vld [vmem:[#allocation11 + $0x38] sm:$0xff]  }
 0x212   : > { %2238 = vrsqrt.f32 %v786_v14  ;;  %v1066_v26 = vxor.u32 %v1034_v51, %v1002_v38  ;;  %v1081_v34 = vxor.u32 %v1049_v54, %v1017_v39  ;;  %v953_v5 = vmul.u32 128, %v921_v47 }
 0x213   : > { %v1082_v33 = vxor.u32 %v1050_v60, %v1018_v40  ;;  %v1036_v14 = vshrl.u32 %v1004_v62, 16  ;;  %v954_v27 = vmul.u32 128, %v922_v9  ;;  %v1097_v17 = vmul.u32 2146121005, %v1065_v23 }
 0x214   : > { %2035 = vmatpush3.bf16.msra.mxu0 %v2234_v45  ;;  %2102 = vmatpush3.bf16.msra.mxu1 %v2234_v45  ;;  %v1035_v45 = vshrl.u32 %v1003_v61, 16  ;;  %v1098_v15 = vmul.u32 2146121005, %v1066_v26  ;;  %v985_v41 = vadd.s32 %v953_v5, %v2956_v16  ;;  %v1113_v35 = vmul.u32 2146121005, %v1081_v34 }
 0x215   : > { %2036 = vmatprep.subr.bf16.mxu0 %v2235_v22  ;;  %2095 = vmatprep.subr.bf16.mxu1 %v2235_v22  ;;  %v1114_v38 = vmul.u32 2146121005, %v1082_v33  ;;  %v1068_v46 = vxor.u32 %v1036_v14, %v1004_v62  ;;  %v1129_v40 = vshrl.u32 %v1097_v17, 15  ;;  %v986_v50 = vadd.s32 %v954_v27, %v2956_v16 }
 0x216   : > { %v1067_v39 = vxor.u32 %v1035_v45, %v1003_v61  ;;  %v1130_v47 = vshrl.u32 %v1098_v15, 15  ;;  %v1145_v51 = vshrl.u32 %v1113_v35, 15 }
 0x217   : > { %v1146_v54 = vshrl.u32 %v1114_v38, 15  ;;  %v1100_v9 = vmul.u32 2146121005, %v1068_v46  ;;  %v1161_v59 = vxor.u32 %v1129_v40, %v1097_v17  ;;  %v1020_v26 = vxor.u32 %v2983_v32, %v986_v50 }
 0x218   : > { %2037 = vmatpush3.bf16.msra.mxu0 %v2235_v22  ;;  %2103 = vmatpush3.bf16.msra.mxu1 %v2235_v22  ;;  %v1019_v22 = vxor.u32 %v2983_v32, %v985_v41  ;;  %v1099_v60 = vmul.u32 2146121005, %v1067_v39  ;;  %v1162_v23 = vxor.u32 %v1130_v47, %v1098_v15  ;;  %v1177_v33 = vxor.u32 %v1145_v51, %v1113_v35 }
 0x219   : > { %2038 = vmatprep.subr.bf16.mxu0 %v2236_v55  ;;  %2096 = vmatprep.subr.bf16.mxu1 %v2236_v55  ;;  %v1178_v61 = vxor.u32 %v1146_v54, %v1114_v38  ;;  %v1132_v5 = vshrl.u32 %v1100_v9, 15  ;;  %v1193_v45 = vmul.u32 2221713035, %v1161_v59  ;;  %v797_v41 = vsub.f32 %v2756_v0, %v2968_v44 }
 0x21a   : > { %v1051_v34 = vshrl.u32 %v1019_v22, 16  ;;  %v1131_v62 = vshrl.u32 %v1099_v60, 15  ;;  %v1194_v14 = vmul.u32 2221713035, %v1162_v23  ;;  %v1209_v15 = vmul.u32 2221713035, %v1177_v33 }
 0x21b   : > { %v1210_v39 = vmul.u32 2221713035, %v1178_v61  ;;  %v1225_v40 = vshrl.u32 %v1193_v45, 16  ;;  %v1164_v38 = vxor.u32 %v1132_v5, %v1100_v9  ;;  %v1052_v47 = vshrl.u32 %v1020_v26, 16 }
 0x21c   : > { %2039 = vmatpush3.bf16.msra.mxu0 %v2236_v55  ;;  %2104 = vmatpush3.bf16.msra.mxu1 %v2236_v55  ;;  %v2239_v27 = vpop.eup %2238  ;;  %v798_v55 = vsub.f32 %v2760_v6, %v2968_v44  ;;  %v1163_v46 = vxor.u32 %v1131_v62, %v1099_v60  ;;  %v1226_v35 = vshrl.u32 %v1194_v14, 16  ;;  %v3371_v50 = vsub.s32 0, %v2950_v4 }
 0x21d   : > { %2040 = vmatprep.subr.bf16.mxu0 %v2237_v8  ;;  %2097 = vmatprep.subr.bf16.mxu1 %v2237_v8  ;;  %v788_v17 = vmul.f32 2.0, %v2239_v27  ;;  %v1241_v54 = vshrl.u32 %v1209_v15, 16  ;;  %v1242_v59 = vshrl.u32 %v1210_v39, 16  ;;  %v1083_v0 = vxor.u32 %v1051_v34, %v1019_v22 }
 0x21e   : > { %v1257_v23 = vxor.u32 %v1225_v40, %v1193_v45  ;;  %v1258_v21 = vxor.u32 %v1226_v35, %v1194_v14  ;;  %v1195_v6 = vmul.u32 2221713035, %v1163_v46  ;;  %v1196_v27 = vmul.u32 2221713035, %v1164_v38 }
 0x21f   : > { %v3010_v51 = vrot.slane %v788_v17, %v3371_v50  ;;  %v3372_v60 = vsub.f32 %v2748_v52, %v2968_v44  ;;  %v3373_v9 = vsub.f32 %v2752_v58, %v2968_v44  ;;  %v3374_v61 = vsub.f32 %v2750_v53, %v2968_v44 }
 0x220   : > { %2041 = vmatpush3.bf16.msra.mxu0 %v2237_v8  ;;  %2105 = vmatpush3.bf16.msra.mxu1 %v2237_v8  ;;  %vm1289_vm0 = vcmp.ge.s32.totalorder %v1257_v23, 0  ;;  %vm1290_vm1 = vcmp.ge.s32.totalorder %v1258_v21, 0  ;;  %v1273_v34 = vxor.u32 %v1241_v54, %v1209_v15  ;;  %v1274_v5 = vxor.u32 %v1242_v59, %v1210_v39 }
 0x221   : > { %v833_v8 = vmul.f32 %v3010_v51, %v3372_v60  ;;  %v834_v33 = vmul.f32 %v3010_v51, %v3373_v9  ;;  %v849_v62 = vmul.f32 %v3010_v51, %v3374_v61  ;;  %v850_v22 = vmul.f32 %v3010_v51, %v812_v29 }
 0x222   : > { %v2439_v45 = vmov 0.0   ;;  %v1084_v17 = vxor.u32 %v1052_v47, %v1020_v26  ;;  %v1115_v58 = vmul.u32 2146121005, %v1083_v0  ;;  %vm1305_vm2 = vcmp.ge.s32.totalorder %v1273_v34, 0 }
 0x223   : > { %v1842_v52 = vsel %vm1289_vm0, 1.0, %v2439_v45  ;;  %v1843_v14 = vsel %vm1290_vm1, 1.0, %v2439_v45  ;;  %vm1306_vm3 = vcmp.ge.s32.totalorder %v1274_v5, 0  ;;  %v1858_v53 = vsel %vm1305_vm2, 1.0, %v2439_v45 }
 0x224   : > { %v1385_v46 = vmul.f32 %v1842_v52, %v833_v8  ;;  %v1386_v40 = vmul.f32 %v1843_v14, %v834_v33  ;;  %v1859_v35 = vsel %vm1306_vm3, 1.0, %v2439_v45  ;;  %v1227_v29 = vshrl.u32 %v1195_v6, 16 }
 0x225   : > { %v1228_v38 = vshrl.u32 %v1196_v27, 16  ;;  %v1401_v15 = vmul.f32 %v1858_v53, %v849_v62  ;;  %v1402_v39 = vmul.f32 %v1859_v35, %v850_v22  ;;  %v835_v50 = vmul.f32 %v3010_v51, %v797_v41 }
 0x226   : > { %v1417_v21 = vpack.c.bf16 %v1386_v40, %v1385_v46  ;;  %v836_v54 = vmul.f32 %v3010_v51, %v798_v55  ;;  %v1259_v59 = vxor.u32 %v1227_v29, %v1195_v6  ;;  %v1116_v47 = vmul.u32 2146121005, %v1084_v17 }
 0x227   : > { %v1260_v26 = vxor.u32 %v1228_v38, %v1196_v27  ;;  %v1425_v0 = vpack.c.bf16 %v1402_v39, %v1401_v15  ;;  %v813_v23 = vsub.f32 %v2758_v1, %v2968_v44  ;;  %v1147_v60 = vshrl.u32 %v1115_v58, 15 }
 0x228   : > { %2042 = vmatprep.mubr.bf16.mxu0 %v1417_v21  ;;  %vm1291_vm4 = vcmp.ge.s32.totalorder %v1259_v59, 0  ;;  %v1148_v8 = vshrl.u32 %v1116_v47, 15  ;;  %v872_v9 = vadd.s32 32, %v2950_v4  ;;  %v814_v55 = vsub.f32 %v2762_v7, %v2968_v44 }
 0x229   : > { %vm1292_vm5 = vcmp.ge.s32.totalorder %v1260_v26, 0  ;;  %2058 = vmatprep.mubr.bf16.mxu1 %v1425_v0  ;;  %v1844_v33 = vsel %vm1291_vm4, 1.0, %v2439_v45  ;;  %v1179_v6 = vxor.u32 %v1147_v60, %v1115_v58  ;;  %v873_v1 = vadd.s32 40, %v2950_v4 }
 0x22a   : > { %v1845_v41 = vsel %vm1292_vm5, 1.0, %v2439_v45  ;;  %v1387_v27 = vmul.f32 %v1844_v33, %v835_v50  ;;  %v1180_v62 = vxor.u32 %v1148_v8, %v1116_v47  ;;  %v799_v34 = vsub.f32 %v2764_v12, %v2968_v44 }
 0x22b   : > { %v1388_v61 = vmul.f32 %v1845_v41, %v836_v54  ;;  %v1211_v22 = vmul.u32 2221713035, %v1179_v6  ;;  %v907_v5 = vadd.s32 %v2948_v63, %v872_v9  ;;  %v908_v17 = vadd.s32 %v2948_v63, %v873_v1 }
 0x22c   : > { %v1212_v14 = vmul.u32 2221713035, %v1180_v62  ;;  %v888_v46 = vadd.s32 160, %v2950_v4  ;;  %v851_v7 = vmul.f32 %v3010_v51, %v813_v23  ;;  %v852_v58 = vmul.f32 %v3010_v51, %v814_v55 }
 0x22d   : > { %v1418_v52 = vpack.c.bf16 %v1388_v61, %v1387_v27  ;;  %v1243_v40 = vshrl.u32 %v1211_v22, 16  ;;  %v939_v53 = vmul.u32 128, %v907_v5  ;;  %v940_v29 = vmul.u32 128, %v908_v17 }
 0x22e   : > { %v1244_v35 = vshrl.u32 %v1212_v14, 16  ;;  %v889_v38 = vadd.s32 168, %v2950_v4  ;;  %v923_v12 = vadd.s32 %v2948_v63, %v888_v46  ;;  %v800_v15 = vsub.f32 %v2768_v18, %v2968_v44 }
 0x22f   : > { %2043 = vmatmul.mubr.bf16.vlgmr.msra.gmra.mrb[0].mxu0 %v1418_v52  ;;  %v1275_v21 = vxor.u32 %v1243_v40, %v1211_v22  ;;  %v3051_v39 = vmul.f32 %v3010_v51, %v799_v34  ;;  %v971_v50 = vadd.s32 %v939_v53, %v2956_v16  ;;  %v972_v59 = vadd.s32 %v940_v29, %v2956_v16 }
 0x230   : > { %v1276_v54 = vxor.u32 %v1244_v35, %v1212_v14  ;;  %v924_v26 = vadd.s32 %v2948_v63, %v889_v38  ;;  %v955_v47 = vmul.u32 128, %v923_v12  ;;  %v815_v23 = vsub.f32 %v2766_v13, %v2968_v44 }
 0x231   : > { %vm1307_vm6 = vcmp.ge.s32.totalorder %v1275_v21, 0  ;;  %v1005_v0 = vxor.u32 %v2983_v32, %v971_v50  ;;  %v816_v18 = vsub.f32 %v2770_v19, %v2968_v44  ;;  %v1006_v8 = vxor.u32 %v2983_v32, %v972_v59 }
 0x232   : > { %vm1308_vm7 = vcmp.ge.s32.totalorder %v1276_v54, 0  ;;  %v1860_v60 = vsel %vm1307_vm6, 1.0, %v2439_v45  ;;  %v956_v9 = vmul.u32 128, %v924_v26  ;;  %v987_v6 = vadd.s32 %v955_v47, %v2956_v16 }
 0x233   : > { %v1861_v33 = vsel %vm1308_vm7, 1.0, %v2439_v45  ;;  %v1403_v41 = vmul.f32 %v1860_v60, %v851_v7  ;;  %v1037_v55 = vshrl.u32 %v1005_v0, 16  ;;  %v1038_v61 = vshrl.u32 %v1006_v8, 16 }
 0x234   : > { %v1404_v27 = vmul.f32 %v1861_v33, %v852_v58  ;;  %v988_v62 = vadd.s32 %v956_v9, %v2956_v16  ;;  %v874_v13 = vadd.s32 48, %v2950_v4  ;;  %v3068_v19 = vmul.f32 %v3010_v51, %v800_v15 }
 0x235   : > { %v1069_v1 = vxor.u32 %v1037_v55, %v1005_v0  ;;  %v1021_v22 = vxor.u32 %v2983_v32, %v987_v6  ;;  %v875_v34 = vadd.s32 56, %v2950_v4  ;;  %v1070_v52 = vxor.u32 %v1038_v61, %v1006_v8 }
 0x236   : > { %v1426_v5 = vpack.c.bf16 %v1404_v27, %v1403_v41  ;;  %v1022_v14 = vxor.u32 %v2983_v32, %v988_v62  ;;  %v909_v17 = vadd.s32 %v2948_v63, %v874_v13  ;;  %v3075_v7 = vmul.f32 %v3010_v51, %v815_v23 }
 0x237   : > { %v1101_v46 = vmul.u32 2146121005, %v1069_v1  ;;  %v1053_v58 = vshrl.u32 %v1021_v22, 16  ;;  %v910_v40 = vadd.s32 %v2948_v63, %v875_v34  ;;  %v1102_v53 = vmul.u32 2146121005, %v1070_v52 }
 0x238   : > { %2059 = vmatmul.mubr.bf16.vlgmr.msra.gmra.mrb[0].mxu1 %v1426_v5  ;;  %v3079_v35 = vmul.f32 %v3010_v51, %v816_v18  ;;  %v1054_v29 = vshrl.u32 %v1022_v14, 16  ;;  %v941_v38 = vmul.u32 128, %v909_v17  ;;  %v801_v15 = vsub.f32 %v2772_v24, %v2968_v44 }
 0x239   : > { %v1133_v12 = vshrl.u32 %v1101_v46, 15  ;;  %v1085_v21 = vxor.u32 %v1053_v58, %v1021_v22  ;;  %v942_v50 = vmul.u32 128, %v910_v40  ;;  %v1134_v54 = vshrl.u32 %v1102_v53, 15 }
 0x23a   : > { %v1086_v59 = vxor.u32 %v1054_v29, %v1022_v14  ;;  %v973_v26 = vadd.s32 %v941_v38, %v2956_v16  ;;  %v890_v47 = vadd.s32 176, %v2950_v4  ;;  %v891_v18 = vadd.s32 184, %v2950_v4 }
 0x23b   : > { %v1165_v0 = vxor.u32 %v1133_v12, %v1101_v46  ;;  %v1117_v23 = vmul.u32 2146121005, %v1085_v21  ;;  %v974_v60 = vadd.s32 %v942_v50, %v2956_v16  ;;  %v1166_v8 = vxor.u32 %v1134_v54, %v1102_v53 }
 0x23c   : > { %v1118_v9 = vmul.u32 2146121005, %v1086_v59  ;;  %v1007_v33 = vxor.u32 %v2983_v32, %v973_v26  ;;  %v925_v41 = vadd.s32 %v2948_v63, %v890_v47  ;;  %v926_v61 = vadd.s32 %v2948_v63, %v891_v18 }
 0x23d   : > { %v1197_v55 = vmul.u32 2221713035, %v1165_v0  ;;  %v1149_v6 = vshrl.u32 %v1117_v23, 15  ;;  %v1008_v27 = vxor.u32 %v2983_v32, %v974_v60  ;;  %v1198_v62 = vmul.u32 2221713035, %v1166_v8 }
 0x23e   : > { %v1150_v13 = vshrl.u32 %v1118_v9, 15  ;;  %v1039_v1 = vshrl.u32 %v1007_v33, 16  ;;  %v957_v22 = vmul.u32 128, %v925_v41  ;;  %v958_v14 = vmul.u32 128, %v926_v61 }
 0x23f   : > { %v1229_v34 = vshrl.u32 %v1197_v55, 16  ;;  %v1181_v5 = vxor.u32 %v1149_v6, %v1117_v23  ;;  %v1040_v52 = vshrl.u32 %v1008_v27, 16  ;;  %v1230_v17 = vshrl.u32 %v1198_v62, 16 }
 0x240   : > { %v1182_v46 = vxor.u32 %v1150_v13, %v1118_v9  ;;  %v1071_v58 = vxor.u32 %v1039_v1, %v1007_v33  ;;  %v989_v40 = vadd.s32 %v957_v22, %v2956_v16  ;;  %v990_v12 = vadd.s32 %v958_v14, %v2956_v16 }
 0x241   : > { %v1261_v53 = vxor.u32 %v1229_v34, %v1197_v55  ;;  %v1213_v29 = vmul.u32 2221713035, %v1181_v5  ;;  %v1072_v38 = vxor.u32 %v1040_v52, %v1008_v27  ;;  %v1262_v21 = vxor.u32 %v1230_v17, %v1198_v62 }
 0x242   : > { %v1214_v50 = vmul.u32 2221713035, %v1182_v46  ;;  %v1103_v54 = vmul.u32 2146121005, %v1071_v58  ;;  %v1023_v59 = vxor.u32 %v2983_v32, %v989_v40  ;;  %v1024_v0 = vxor.u32 %v2983_v32, %v990_v12 }
 0x243   : > { %vm1293_vm8 = vcmp.ge.s32.totalorder %v1261_v53, 0  ;;  %v1245_v26 = vshrl.u32 %v1213_v29, 16  ;;  %v1104_v47 = vmul.u32 2146121005, %v1072_v38  ;;  %vm1294_vm9 = vcmp.ge.s32.totalorder %v1262_v21, 0 }
 0x244   : > { %v1846_v23 = vsel %vm1293_vm8, 1.0, %v2439_v45  ;;  %v1246_v60 = vshrl.u32 %v1214_v50, 16  ;;  %v1135_v18 = vshrl.u32 %v1103_v54, 15  ;;  %v1847_v8 = vsel %vm1294_vm9, 1.0, %v2439_v45 }
 0x245   : > { %v1389_v9 = vmul.f32 %v1846_v23, %v3051_v39  ;;  %v1277_v33 = vxor.u32 %v1245_v26, %v1213_v29  ;;  %v1136_v41 = vshrl.u32 %v1104_v47, 15  ;;  %v1390_v55 = vmul.f32 %v1847_v8, %v3068_v19 }
 0x246   : > { %v1278_v6 = vxor.u32 %v1246_v60, %v1214_v50  ;;  %v1167_v27 = vxor.u32 %v1135_v18, %v1103_v54  ;;  %v1055_v61 = vshrl.u32 %v1023_v59, 16  ;;  %v802_v62 = vsub.f32 %v2776_v30, %v2968_v44 }
 0x247   : > { %vm1309_vm10 = vcmp.ge.s32.totalorder %v1277_v33, 0  ;;  %v1168_v13 = vxor.u32 %v1136_v41, %v1104_v47  ;;  %v1056_v1 = vshrl.u32 %v1024_v0, 16  ;;  %v1419_v22 = vpack.c.bf16 %v1390_v55, %v1389_v9 }
 0x248   : > { %vm1310_vm11 = vcmp.ge.s32.totalorder %v1278_v6, 0  ;;  %v1862_v34 = vsel %vm1309_vm10, 1.0, %v2439_v45  ;;  %v1199_v5 = vmul.u32 2221713035, %v1167_v27  ;;  %v1087_v19 = vxor.u32 %v1055_v61, %v1023_v59 }
 0x249   : > { %v1863_v39 = vsel %vm1310_vm11, 1.0, %v2439_v45  ;;  %v1405_v52 = vmul.f32 %v1862_v34, %v3075_v7  ;;  %v1200_v14 = vmul.u32 2221713035, %v1168_v13  ;;  %2046 = vmatprep.mubr.bf16.mxu0 %v1419_v22  ;;  %v1088_v58 = vxor.u32 %v1056_v1, %v1024_v0 }
 0x24a   : > { %v1406_v17 = vmul.f32 %v1863_v39, %v3079_v35  ;;  %v1231_v46 = vshrl.u32 %v1199_v5, 16  ;;  %v839_v30 = vmul.f32 %v3010_v51, %v801_v15  ;;  %v1119_v53 = vmul.u32 2146121005, %v1087_v19 }
 0x24b   : > { %v1232_v40 = vshrl.u32 %v1200_v14, 16  ;;  %v876_v29 = vadd.s32 64, %v2950_v4  ;;  %v840_v12 = vmul.f32 %v3010_v51, %v802_v62  ;;  %v1120_v21 = vmul.u32 2146121005, %v1088_v58 }
 0x24c   : > { %v1427_v38 = vpack.c.bf16 %v1406_v17, %v1405_v52  ;;  %v1263_v7 = vxor.u32 %v1231_v46, %v1199_v5  ;;  %v1151_v54 = vshrl.u32 %v1119_v53, 15  ;;  %v877_v35 = vadd.s32 72, %v2950_v4 }
 0x24d   : > { %v1264_v50 = vxor.u32 %v1232_v40, %v1200_v14  ;;  %v911_v59 = vadd.s32 %v2948_v63, %v876_v29  ;;  %v817_v24 = vsub.f32 %v2774_v25, %v2968_v44  ;;  %v1152_v15 = vshrl.u32 %v1120_v21, 15 }
 0x24e   : > { %2062 = vmatprep.mubr.bf16.mxu1 %v1427_v38  ;;  %vm1295_vm12 = vcmp.ge.s32.totalorder %v1263_v7, 0  ;;  %v1183_v47 = vxor.u32 %v1151_v54, %v1119_v53  ;;  %v912_v0 = vadd.s32 %v2948_v63, %v877_v35  ;;  %v818_v33 = vsub.f32 %v2778_v31, %v2968_v44 }
 0x24f   : > { %vm1296_vm13 = vcmp.ge.s32.totalorder %v1264_v50, 0  ;;  %v1848_v26 = vsel %vm1295_vm12, 1.0, %v2439_v45  ;;  %v1184_v18 = vxor.u32 %v1152_v15, %v1120_v21  ;;  %v943_v8 = vmul.u32 128, %v911_v59 }
 0x250   : > { %v1849_v23 = vsel %vm1296_vm13, 1.0, %v2439_v45  ;;  %v1391_v60 = vmul.f32 %v1848_v26, %v839_v30  ;;  %v1215_v41 = vmul.u32 2221713035, %v1183_v47  ;;  %v944_v55 = vmul.u32 128, %v912_v0 }
 0x251   : > { %v1392_v9 = vmul.f32 %v1849_v23, %v840_v12  ;;  %v1216_v6 = vmul.u32 2221713035, %v1184_v18  ;;  %v803_v25 = vsub.f32 %v2780_v36, %v2968_v44  ;;  %v975_v27 = vadd.s32 %v943_v8, %v2956_v16 }
 0x252   : > { %v892_v61 = vadd.s32 192, %v2950_v4  ;;  %v1247_v13 = vshrl.u32 %v1215_v41, 16  ;;  %v976_v1 = vadd.s32 %v944_v55, %v2956_v16  ;;  %v893_v22 = vadd.s32 200, %v2950_v4 }
 0x253   : > { %v1420_v62 = vpack.c.bf16 %v1392_v9, %v1391_v60  ;;  %v855_v34 = vmul.f32 %v3010_v51, %v817_v24  ;;  %v1248_v5 = vshrl.u32 %v1216_v6, 16  ;;  %v1009_v31 = vxor.u32 %v2983_v32, %v975_v27 }
 0x254   : > { %v927_v39 = vadd.s32 %v2948_v63, %v892_v61  ;;  %v856_v36 = vmul.f32 %v3010_v51, %v818_v33  ;;  %v1279_v52 = vxor.u32 %v1247_v13, %v1215_v41  ;;  %v1010_v14 = vxor.u32 %v2983_v32, %v976_v1 }
 0x255   : > { %2047 = vmatmul.mubr.bf16.gmra.mrb[4].mxu0 %v1420_v62  ;;  %v928_v19 = vadd.s32 %v2948_v63, %v893_v22  ;;  %v1280_v17 = vxor.u32 %v1248_v5, %v1216_v6  ;;  %v804_v46 = vsub.f32 %v2784_v42, %v2968_v44  ;;  %v1041_v58 = vshrl.u32 %v1009_v31, 16 }
 0x256   : > { %v959_v30 = vmul.u32 128, %v927_v39  ;;  %vm1311_vm14 = vcmp.ge.s32.totalorder %v1279_v52, 0  ;;  %v3135_v40 = vmul.f32 %v3010_v51, %v803_v25  ;;  %v1042_v53 = vshrl.u32 %v1010_v14, 16 }
 0x257   : > { %v960_v29 = vmul.u32 128, %v928_v19  ;;  %vm1312_vm15 = vcmp.ge.s32.totalorder %v1280_v17, 0  ;;  %v1864_v38 = vsel %vm1311_vm14, 1.0, %v2439_v45  ;;  %v1073_v12 = vxor.u32 %v1041_v58, %v1009_v31 }
 0x258   : > { %v991_v7 = vadd.s32 %v959_v30, %v2956_v16  ;;  %v1865_v21 = vsel %vm1312_vm15, 1.0, %v2439_v45  ;;  %v1407_v50 = vmul.f32 %v1864_v38, %v855_v34  ;;  %v1074_v54 = vxor.u32 %v1042_v53, %v1010_v14 }
 0x259   : > { %v992_v42 = vadd.s32 %v960_v29, %v2956_v16  ;;  %v1408_v35 = vmul.f32 %v1865_v21, %v856_v36  ;;  %v1105_v59 = vmul.u32 2146121005, %v1073_v12  ;;  %v878_v15 = vadd.s32 80, %v2950_v4 }
 0x25a   : > { %v1025_v24 = vxor.u32 %v2983_v32, %v991_v7  ;;  %v1106_v26 = vmul.u32 2146121005, %v1074_v54  ;;  %v819_v47 = vsub.f32 %v2782_v37, %v2968_v44  ;;  %v879_v23 = vadd.s32 88, %v2950_v4 }
 0x25b   : > { %v1026_v0 = vxor.u32 %v2983_v32, %v992_v42  ;;  %v1428_v60 = vpack.c.bf16 %v1408_v35, %v1407_v50  ;;  %v1137_v18 = vshrl.u32 %v1105_v59, 15  ;;  %v913_v9 = vadd.s32 %v2948_v63, %v878_v15 }
 0x25c   : > { %v1057_v8 = vshrl.u32 %v1025_v24, 16  ;;  %v842_v33 = vmul.f32 %v3010_v51, %v804_v46  ;;  %v1138_v41 = vshrl.u32 %v1106_v26, 15  ;;  %v914_v6 = vadd.s32 %v2948_v63, %v879_v23 }
 0x25d   : > { %v1058_v55 = vshrl.u32 %v1026_v0, 16  ;;  %2063 = vmatmul.mubr.bf16.gmra.mrb[4].mxu1 %v1428_v60  ;;  %v1169_v25 = vxor.u32 %v1137_v18, %v1105_v59  ;;  %v820_v37 = vsub.f32 %v2786_v43, %v2968_v44  ;;  %v945_v61 = vmul.u32 128, %v913_v9 }
 0x25e   : > { %v1089_v27 = vxor.u32 %v1057_v8, %v1025_v24  ;;  %v1170_v62 = vxor.u32 %v1138_v41, %v1106_v26  ;;  %v857_v13 = vmul.f32 %v3010_v51, %v819_v47  ;;  %v946_v22 = vmul.u32 128, %v914_v6 }
 0x25f   : > { %v1090_v1 = vxor.u32 %v1058_v55, %v1026_v0  ;;  %v1201_v34 = vmul.u32 2221713035, %v1169_v25  ;;  %v977_v31 = vadd.s32 %v945_v61, %v2956_v16  ;;  %v894_v39 = vadd.s32 208, %v2950_v4 }
 0x260   : > { %v1121_v5 = vmul.u32 2146121005, %v1089_v27  ;;  %v1202_v36 = vmul.u32 2221713035, %v1170_v62  ;;  %v978_v14 = vadd.s32 %v946_v22, %v2956_v16  ;;  %v895_v19 = vadd.s32 216, %v2950_v4 }
 0x261   : > { %v1122_v52 = vmul.u32 2146121005, %v1090_v1  ;;  %v1233_v43 = vshrl.u32 %v1201_v34, 16  ;;  %v1011_v46 = vxor.u32 %v2983_v32, %v977_v31  ;;  %v929_v58 = vadd.s32 %v2948_v63, %v894_v39 }
 0x262   : > { %v1153_v17 = vshrl.u32 %v1121_v5, 15  ;;  %v1234_v30 = vshrl.u32 %v1202_v36, 16  ;;  %v1012_v29 = vxor.u32 %v2983_v32, %v978_v14  ;;  %v930_v38 = vadd.s32 %v2948_v63, %v895_v19 }
 0x263   : > { %v1154_v53 = vshrl.u32 %v1122_v52, 15  ;;  %v1265_v12 = vxor.u32 %v1233_v43, %v1201_v34  ;;  %v1043_v21 = vshrl.u32 %v1011_v46, 16  ;;  %v961_v50 = vmul.u32 128, %v929_v58 }
 0x264   : > { %v1185_v7 = vxor.u32 %v1153_v17, %v1121_v5  ;;  %v1266_v54 = vxor.u32 %v1234_v30, %v1202_v36  ;;  %v1044_v35 = vshrl.u32 %v1012_v29, 16  ;;  %v962_v59 = vmul.u32 128, %v930_v38 }
 0x265   : > { %v1186_v42 = vxor.u32 %v1154_v53, %v1122_v52  ;;  %vm1297_vm0 = vcmp.ge.s32.totalorder %v1265_v12, 0  ;;  %v1075_v15 = vxor.u32 %v1043_v21, %v1011_v46  ;;  %v993_v26 = vadd.s32 %v961_v50, %v2956_v16 }
 0x266   : > { %v1217_v24 = vmul.u32 2221713035, %v1185_v7  ;;  %vm1298_vm1 = vcmp.ge.s32.totalorder %v1266_v54, 0  ;;  %v1850_v47 = vsel %vm1297_vm0, 1.0, %v2439_v45  ;;  %v1076_v23 = vxor.u32 %v1044_v35, %v1012_v29 }
 0x267   : > { %v1218_v0 = vmul.u32 2221713035, %v1186_v42  ;;  %v1851_v60 = vsel %vm1298_vm1, 1.0, %v2439_v45  ;;  %v1393_v18 = vmul.f32 %v1850_v47, %v3135_v40  ;;  %v1107_v9 = vmul.u32 2146121005, %v1075_v15 }
 0x268   : > { %v1249_v8 = vshrl.u32 %v1217_v24, 16  ;;  %v1394_v41 = vmul.f32 %v1851_v60, %v842_v33  ;;  %v1108_v6 = vmul.u32 2146121005, %v1076_v23  ;;  %v994_v25 = vadd.s32 %v962_v59, %v2956_v16 }
 0x269   : > { %v1250_v55 = vshrl.u32 %v1218_v0, 16  ;;  %v858_v27 = vmul.f32 %v3010_v51, %v820_v37  ;;  %v1139_v62 = vshrl.u32 %v1107_v9, 15  ;;  %v1027_v1 = vxor.u32 %v2983_v32, %v993_v26 }
 0x26a   : > { %v1281_v61 = vxor.u32 %v1249_v8, %v1217_v24  ;;  %v1421_v22 = vpack.c.bf16 %v1394_v41, %v1393_v18  ;;  %v1140_v5 = vshrl.u32 %v1108_v6, 15  ;;  %v1028_v31 = vxor.u32 %v2983_v32, %v994_v25 }
 0x26b   : > { %v1282_v34 = vxor.u32 %v1250_v55, %v1218_v0  ;;  %v805_v40 = vsub.f32 %v2788_v48, %v2968_v44  ;;  %v1171_v33 = vxor.u32 %v1139_v62, %v1107_v9  ;;  %v1059_v39 = vshrl.u32 %v1027_v1, 16 }
 0x26c   : > { %vm1313_vm2 = vcmp.ge.s32.totalorder %v1281_v61, 0  ;;  %2050 = vmatprep.mubr.bf16.mxu0 %v1421_v22  ;;  %v1172_v37 = vxor.u32 %v1140_v5, %v1108_v6  ;;  %v1060_v52 = vshrl.u32 %v1028_v31, 16  ;;  %v806_v58 = vsub.f32 %v2792_v56, %v2968_v44 }
 0x26d   : > { %vm1314_vm3 = vcmp.ge.s32.totalorder %v1282_v34, 0  ;;  %v1866_v36 = vsel %vm1313_vm2, 1.0, %v2439_v45  ;;  %v1203_v43 = vmul.u32 2221713035, %v1171_v33  ;;  %v1091_v17 = vxor.u32 %v1059_v39, %v1027_v1 }
 0x26e   : > { %v1867_v14 = vsel %vm1314_vm3, 1.0, %v2439_v45  ;;  %v1409_v19 = vmul.f32 %v1866_v36, %v857_v13  ;;  %v1204_v30 = vmul.u32 2221713035, %v1172_v37  ;;  %v1092_v53 = vxor.u32 %v1060_v52, %v1028_v31 }
 0x26f   : > { %v1410_v46 = vmul.f32 %v1867_v14, %v858_v27  ;;  %v1235_v48 = vshrl.u32 %v1203_v43, 16  ;;  %v1123_v29 = vmul.u32 2146121005, %v1091_v17  ;;  %v880_v38 = vadd.s32 96, %v2950_v4 }
 0x270   : > { %v1236_v7 = vshrl.u32 %v1204_v30, 16  ;;  %v1124_v21 = vmul.u32 2146121005, %v1092_v53  ;;  %v881_v50 = vadd.s32 104, %v2950_v4  ;;  %v843_v54 = vmul.f32 %v3010_v51, %v805_v40 }
 0x271   : > { %v1429_v12 = vpack.c.bf16 %v1410_v46, %v1409_v19  ;;  %v1267_v13 = vxor.u32 %v1235_v48, %v1203_v43  ;;  %v1155_v42 = vshrl.u32 %v1123_v29, 15  ;;  %v915_v35 = vadd.s32 %v2948_v63, %v880_v38 }
 0x272   : > { %v844_v56 = vmul.f32 %v3010_v51, %v806_v58  ;;  %v1268_v59 = vxor.u32 %v1236_v7, %v1204_v30  ;;  %v1156_v24 = vshrl.u32 %v1124_v21, 15  ;;  %v916_v15 = vadd.s32 %v2948_v63, %v881_v50 }
 0x273   : > { %2066 = vmatprep.mubr.bf16.mxu1 %v1429_v12  ;;  %vm1299_vm4 = vcmp.ge.s32.totalorder %v1267_v13, 0  ;;  %v821_v26 = vsub.f32 %v2790_v49, %v2968_v44  ;;  %v1187_v47 = vxor.u32 %v1155_v42, %v1123_v29  ;;  %v947_v0 = vmul.u32 128, %v915_v35 }
 0x274   : > { %vm1300_vm5 = vcmp.ge.s32.totalorder %v1268_v59, 0  ;;  %v1852_v23 = vsel %vm1299_vm4, 1.0, %v2439_v45  ;;  %v1188_v60 = vxor.u32 %v1156_v24, %v1124_v21  ;;  %v948_v18 = vmul.u32 128, %v916_v15 }
 0x275   : > { %v1853_v8 = vsel %vm1300_vm5, 1.0, %v2439_v45  ;;  %v1395_v9 = vmul.f32 %v1852_v23, %v843_v54  ;;  %v1219_v41 = vmul.u32 2221713035, %v1187_v47  ;;  %v979_v55 = vadd.s32 %v947_v0, %v2956_v16 }
 0x276   : > { %v1396_v6 = vmul.f32 %v1853_v8, %v844_v56  ;;  %v822_v25 = vsub.f32 %v2794_v57, %v2968_v44  ;;  %v1220_v27 = vmul.u32 2221713035, %v1188_v60  ;;  %v980_v49 = vadd.s32 %v948_v18, %v2956_v16 }
 0x277   : > { %v1251_v61 = vshrl.u32 %v1219_v41, 16  ;;  %v1013_v62 = vxor.u32 %v2983_v32, %v979_v55  ;;  %v896_v1 = vadd.s32 224, %v2950_v4  ;;  %v897_v22 = vadd.s32 232, %v2950_v4 }
 0x278   : > { %v1422_v34 = vpack.c.bf16 %v1396_v6, %v1395_v9  ;;  %v859_v5 = vmul.f32 %v3010_v51, %v821_v26  ;;  %v1252_v31 = vshrl.u32 %v1220_v27, 16  ;;  %v1014_v40 = vxor.u32 %v2983_v32, %v980_v49 }
 0x279   : > { %v1283_v33 = vxor.u32 %v1251_v61, %v1219_v41  ;;  %v1045_v39 = vshrl.u32 %v1013_v62, 16  ;;  %v931_v57 = vadd.s32 %v2948_v63, %v896_v1  ;;  %v932_v36 = vadd.s32 %v2948_v63, %v897_v22 }
 0x27a   : > { %2051 = vmatmul.mubr.bf16.gmra.mrb[8].mxu0 %v1422_v34  ;;  %v860_v37 = vmul.f32 %v3010_v51, %v822_v25  ;;  %v1284_v52 = vxor.u32 %v1252_v31, %v1220_v27  ;;  %v807_v14 = vsub.f32 %v2796_v2, %v2968_v44  ;;  %v1046_v19 = vshrl.u32 %v1014_v40, 16 }
 0x27b   : > { %vm1315_vm6 = vcmp.ge.s32.totalorder %v1283_v33, 0  ;;  %v1077_v43 = vxor.u32 %v1045_v39, %v1013_v62  ;;  %v963_v17 = vmul.u32 128, %v931_v57  ;;  %v964_v46 = vmul.u32 128, %v932_v36 }
 0x27c   : > { %vm1316_vm7 = vcmp.ge.s32.totalorder %v1284_v52, 0  ;;  %v1868_v58 = vsel %vm1315_vm6, 1.0, %v2439_v45  ;;  %v808_v30 = vsub.f32 %v2800_v10, %v2968_v44  ;;  %v1078_v53 = vxor.u32 %v1046_v19, %v1014_v40 }
 0x27d   : > { %v1869_v48 = vsel %vm1316_vm7, 1.0, %v2439_v45  ;;  %v1411_v29 = vmul.f32 %v1868_v58, %v859_v5  ;;  %v1109_v38 = vmul.u32 2146121005, %v1077_v43  ;;  %v995_v12 = vadd.s32 %v963_v17, %v2956_v16 }
 0x27e   : > { %v1412_v7 = vmul.f32 %v1869_v48, %v860_v37  ;;  %v1110_v2 = vmul.u32 2146121005, %v1078_v53  ;;  %v996_v21 = vadd.s32 %v964_v46, %v2956_v16  ;;  %v882_v50 = vadd.s32 112, %v2950_v4 }
 0x27f   : > { %v845_v54 = vmul.f32 %v3010_v51, %v807_v14  ;;  %v1141_v13 = vshrl.u32 %v1109_v38, 15  ;;  %v1029_v42 = vxor.u32 %v2983_v32, %v995_v12  ;;  %v883_v10 = vadd.s32 120, %v2950_v4 }
 0x280   : > { %v1430_v35 = vpack.c.bf16 %v1412_v7, %v1411_v29  ;;  %v1142_v56 = vshrl.u32 %v1110_v2, 15  ;;  %v1030_v59 = vxor.u32 %v2983_v32, %v996_v21  ;;  %v917_v24 = vadd.s32 %v2948_v63, %v882_v50 }
 0x281   : > { %v846_v15 = vmul.f32 %v3010_v51, %v808_v30  ;;  %v1173_v26 = vxor.u32 %v1141_v13, %v1109_v38  ;;  %v1061_v47 = vshrl.u32 %v1029_v42, 16  ;;  %v918_v0 = vadd.s32 %v2948_v63, %v883_v10 }
 0x282   : > { %2067 = vmatmul.mubr.bf16.gmra.mrb[8].mxu1 %v1430_v35  ;;  %v1174_v23 = vxor.u32 %v1142_v56, %v1110_v2  ;;  %v823_v60 = vsub.f32 %v2798_v3, %v2968_v44  ;;  %v1062_v18 = vshrl.u32 %v1030_v59, 16  ;;  %v949_v8 = vmul.u32 128, %v917_v24 }
 0x283   : > { %v1205_v9 = vmul.u32 2221713035, %v1173_v26  ;;  %v824_v41 = vsub.f32 %v2802_v11, %v2968_v44  ;;  %v1093_v55 = vxor.u32 %v1061_v47, %v1029_v42  ;;  %v950_v6 = vmul.u32 128, %v918_v0 }
 0x284   : > { %v1206_v25 = vmul.u32 2221713035, %v1174_v23  ;;  %v1094_v27 = vxor.u32 %v1062_v18, %v1030_v59  ;;  %v981_v49 = vadd.s32 %v949_v8, %v2956_v16  ;;  %v898_v61 = vadd.s32 240, %v2950_v4 }
 0x285   : > { %v1237_v62 = vshrl.u32 %v1205_v9, 16  ;;  %v1125_v1 = vmul.u32 2146121005, %v1093_v55  ;;  %v982_v22 = vadd.s32 %v950_v6, %v2956_v16  ;;  %v899_v3 = vadd.s32 248, %v2950_v4 }
 0x286   : > { %v1238_v34 = vshrl.u32 %v1206_v25, 16  ;;  %v1126_v5 = vmul.u32 2146121005, %v1094_v27  ;;  %v1015_v31 = vxor.u32 %v2983_v32, %v981_v49  ;;  %v933_v11 = vadd.s32 %v2948_v63, %v898_v61 }
 0x287   : > { %v1269_v40 = vxor.u32 %v1237_v62, %v1205_v9  ;;  %v1157_v33 = vshrl.u32 %v1125_v1, 15  ;;  %v1016_v39 = vxor.u32 %v2983_v32, %v982_v22  ;;  %v934_v57 = vadd.s32 %v2948_v63, %v899_v3 }
 0x288   : > { %v1270_v36 = vxor.u32 %v1238_v34, %v1206_v25  ;;  %v1158_v37 = vshrl.u32 %v1126_v5, 15  ;;  %v1047_v52 = vshrl.u32 %v1015_v31, 16  ;;  %v965_v14 = vmul.u32 128, %v933_v11 }
 0x289   : > { %vm1301_vm8 = vcmp.ge.s32.totalorder %v1269_v40, 0  ;;  %v1189_v19 = vxor.u32 %v1157_v33, %v1125_v1  ;;  %v1048_v43 = vshrl.u32 %v1016_v39, 16  ;;  %v966_v4 = vmul.u32 128, %v934_v57 }
 0x28a   : > { %vm1302_vm9 = vcmp.ge.s32.totalorder %v1270_v36, 0  ;;  %v1854_v17 = vsel %vm1301_vm8, 1.0, %v2439_v45  ;;  %v1190_v46 = vxor.u32 %v1158_v37, %v1126_v5  ;;  %v1079_v58 = vxor.u32 %v1047_v52, %v1015_v31  ;;  %v3375_v36 = vld [vmem:[#allocation16_spill] sm:$0xff] }
 0x28b   : > { %v1855_v30 = vsel %vm1302_vm9, 1.0, %v2439_v45  ;;  %v1397_v53 = vmul.f32 %v1854_v17, %v845_v54  ;;  %v1221_v48 = vmul.u32 2221713035, %v1189_v19  ;;  %v1080_v29 = vxor.u32 %v1048_v43, %v1016_v39  ;;  %v3376_v19 = vld [vmem:[#allocation17_spill] sm:$0xff] }
 0x28c   : > { %v1398_v38 = vmul.f32 %v1855_v30, %v846_v15  ;;  %v1222_v63 = vmul.u32 2221713035, %v1190_v46  ;;  %v1111_v12 = vmul.u32 2146121005, %v1079_v58  ;;  %v997_v7 = vadd.s32 %v965_v14, %v2956_v16 }
 0x28d   : > { %v861_v2 = vmul.f32 %v3010_v51, %v823_v60  ;;  %v1253_v21 = vshrl.u32 %v1221_v48, 16  ;;  %v1112_v50 = vmul.u32 2146121005, %v1080_v29  ;;  %v998_v13 = vadd.s32 %v966_v4, %v2956_v16 }
 0x28e   : > { %v1423_v42 = vpack.c.bf16 %v1398_v38, %v1397_v53  ;;  %v1254_v10 = vshrl.u32 %v1222_v63, 16  ;;  %v1143_v35 = vshrl.u32 %v1111_v12, 15  ;;  %v1031_v56 = vxor.u32 %v2983_v32, %v997_v7 }
 0x28f   : > { %v862_v54 = vmul.f32 %v3010_v51, %v824_v41  ;;  %v1285_v59 = vxor.u32 %v1253_v21, %v1221_v48  ;;  %v1144_v24 = vshrl.u32 %v1112_v50, 15  ;;  %v1032_v15 = vxor.u32 %v2983_v32, %v998_v13 }
 0x290   : > { %2054 = vmatprep.mubr.bf16.mxu0 %v1423_v42  ;;  %v1286_v26 = vxor.u32 %v1254_v10, %v1222_v63  ;;  %v809_v47 = vsub.f32 %v2804_v20, %v2968_v44  ;;  %v1175_v0 = vxor.u32 %v1143_v35, %v1111_v12  ;;  %v1063_v23 = vshrl.u32 %v1031_v56, 16 }
 0x291   : > { %vm1317_vm10 = vcmp.ge.s32.totalorder %v1285_v59, 0  ;;  %v810_v16 = vsub.f32 %v2808_v28, %v2968_v44  ;;  %v1176_v60 = vxor.u32 %v1144_v24, %v1112_v50  ;;  %v1064_v18 = vshrl.u32 %v1032_v15, 16 }
 0x292   : > { %vm1318_vm11 = vcmp.ge.s32.totalorder %v1286_v26, 0  ;;  %v1870_v8 = vsel %vm1317_vm10, 1.0, %v2439_v45  ;;  %v1207_v9 = vmul.u32 2221713035, %v1175_v0  ;;  %v1095_v41 = vxor.u32 %v1063_v23, %v1031_v56 }
 0x293   : > { %v1871_v32 = vsel %vm1318_vm11, 1.0, %v2439_v45  ;;  %v1413_v55 = vmul.f32 %v1870_v8, %v861_v2  ;;  %v1208_v6 = vmul.u32 2221713035, %v1176_v60  ;;  %v1096_v25 = vxor.u32 %v1064_v18, %v1032_v15 }
 0x294   : > { %v1414_v27 = vmul.f32 %v1871_v32, %v862_v54  ;;  %v1239_v20 = vshrl.u32 %v1207_v9, 16  ;;  %v1127_v49 = vmul.u32 2146121005, %v1095_v41  ;;  %v847_v28 = vmul.f32 %v3010_v51, %v809_v47 }
 0x295   : > { %v1240_v61 = vshrl.u32 %v1208_v6, 16  ;;  %v1128_v62 = vmul.u32 2146121005, %v1096_v25  ;;  %v848_v34 = vmul.f32 %v3010_v51, %v810_v16  ;;  %v825_v37 = vsub.f32 %v3375_v36, %v2968_v44 }
 0x296   : > { %v1431_v1 = vpack.c.bf16 %v1414_v27, %v1413_v55  ;;  %v1271_v22 = vxor.u32 %v1239_v20, %v1207_v9  ;;  %v1159_v3 = vshrl.u32 %v1127_v49, 15  ;;  %v826_v43 = vsub.f32 %v3376_v19, %v2968_v44 }
 0x297   : > { %v1272_v5 = vxor.u32 %v1240_v61, %v1208_v6  ;;  %v1160_v31 = vshrl.u32 %v1128_v62, 15  ;;  %v863_v30 = vmul.f32 %v3010_v51, %v825_v37 }
 0x298   : > { %2070 = vmatprep.mubr.bf16.mxu1 %v1431_v1  ;;  %vm1303_vm12 = vcmp.ge.s32.totalorder %v1271_v22, 0  ;;  %v1191_v11 = vxor.u32 %v1159_v3, %v1127_v49  ;;  %v864_v48 = vmul.f32 %v3010_v51, %v826_v43 }
 0x299   : > { %vm1304_vm13 = vcmp.ge.s32.totalorder %v1272_v5, 0  ;;  %v1856_v40 = vsel %vm1303_vm12, 1.0, %v2439_v45  ;;  %v1192_v33 = vxor.u32 %v1160_v31, %v1128_v62 }
 0x29a   : > { %v1857_v39 = vsel %vm1304_vm13, 1.0, %v2439_v45  ;;  %v1399_v57 = vmul.f32 %v1856_v40, %v847_v28  ;;  %v1223_v52 = vmul.u32 2221713035, %v1191_v11 }
 0x29b   : > { %v1400_v14 = vmul.f32 %v1857_v39, %v848_v34  ;;  %v1224_v4 = vmul.u32 2221713035, %v1192_v33 }
 0x29c   : > { %v1255_v17 = vshrl.u32 %v1223_v52, 16 }
 0x29d   : > { %v1424_v46 = vpack.c.bf16 %v1400_v14, %v1399_v57  ;;  %v1256_v58 = vshrl.u32 %v1224_v4, 16 }
 0x29e   : > { %v1287_v53 = vxor.u32 %v1255_v17, %v1223_v52 }
 0x29f   : > { %2055 = vmatmul.mubr.bf16.gmra.mrb[12].mxu0 %v1424_v46  ;;  %v1288_v29 = vxor.u32 %v1256_v58, %v1224_v4 }
 0x2a0   : > { %vm1319_vm14 = vcmp.ge.s32.totalorder %v1287_v53, 0 }
 0x2a1   : > { %vm1320_vm15 = vcmp.ge.s32.totalorder %v1288_v29, 0  ;;  %v1872_v44 = vsel %vm1319_vm14, 1.0, %v2439_v45 }
 0x2a2   : > { %v1873_v38 = vsel %vm1320_vm15, 1.0, %v2439_v45  ;;  %v1415_v63 = vmul.f32 %v1872_v44, %v863_v30 }
 0x2a3   : > { %v1416_v12 = vmul.f32 %v1873_v38, %v864_v48 }
 0x2a5   : > { %v1432_v7 = vpack.c.bf16 %v1416_v12, %v1415_v63 }
 0x2a7   : > { %2071 = vmatmul.mubr.bf16.gmra.mrb[12].mxu1 %v1432_v7 }
 0x302   : > { %v2044_v2 = vpop.f32.mrb[0].mxu0 }
 0x303   : > { %1660 = vst [vmem:[%s2814_s26 + $0x10] sm:$0xff] %v2044_v2  ;;  %v1531_v51 = vpop.f32.mrb[1].mxu0 }
 0x304   : > { %1658 = vst [vmem:[%s2814_s26] sm:$0xff] %v1531_v51  ;;  %v2045_v21 = vpop.f32.mrb[2].mxu0 }
 0x305   : > { %1661 = vst [vmem:[%s2814_s26 + $0x18] sm:$0xff] %v2045_v21  ;;  %v1534_v50 = vpop.f32.mrb[3].mxu0 }
 0x306   : > { %1659 = vst [vmem:[%s2814_s26 + $0x8] sm:$0xff] %v1534_v50 }
 0x30b   : > { %v2060_v45 = vpop.f32.mrb[0].mxu1 }
 0x30c   : > { %1676 = vst [vmem:[%s2814_s26 + $0x90] sm:$0xff] %v2060_v45  ;;  %v1595_v13 = vpop.f32.mrb[1].mxu1 }
 0x30d   : > { %1674 = vst [vmem:[%s2814_s26 + $0x80] sm:$0xff] %v1595_v13  ;;  %v2061_v42 = vpop.f32.mrb[2].mxu1 }
 0x30e   : > { %1677 = vst [vmem:[%s2814_s26 + $0x98] sm:$0xff] %v2061_v42  ;;  %v1598_v10 = vpop.f32.mrb[3].mxu1 }
 0x30f   : > { %1675 = vst [vmem:[%s2814_s26 + $0x88] sm:$0xff] %v1598_v10 }
 0x328   : > { %v2048_v35 = vpop.f32.mrb[4].mxu0 }
 0x329   : > { %1664 = vst [vmem:[%s2814_s26 + $0x30] sm:$0xff] %v2048_v35  ;;  %v1547_v56 = vpop.f32.mrb[5].mxu0 }
 0x32a   : > { %1662 = vst [vmem:[%s2814_s26 + $0x20] sm:$0xff] %v1547_v56  ;;  %v2049_v54 = vpop.f32.mrb[6].mxu0 }
 0x32b   : > { %1665 = vst [vmem:[%s2814_s26 + $0x38] sm:$0xff] %v2049_v54  ;;  %v1550_v59 = vpop.f32.mrb[7].mxu0 }
 0x32c   : > { %1663 = vst [vmem:[%s2814_s26 + $0x28] sm:$0xff] %v1550_v59 }
 0x330   : > { %v2064_v24 = vpop.f32.mrb[4].mxu1 }
 0x331   : > { %1680 = vst [vmem:[%s2814_s26 + $0xb0] sm:$0xff] %v2064_v24  ;;  %v1611_v15 = vpop.f32.mrb[5].mxu1 }
 0x332   : > { %1678 = vst [vmem:[%s2814_s26 + $0xa0] sm:$0xff] %v1611_v15  ;;  %v2065_v26 = vpop.f32.mrb[6].mxu1 }
 0x333   : > { %1681 = vst [vmem:[%s2814_s26 + $0xb8] sm:$0xff] %v2065_v26  ;;  %v1614_v47 = vpop.f32.mrb[7].mxu1 }
 0x334   : > { %1679 = vst [vmem:[%s2814_s26 + $0xa8] sm:$0xff] %v1614_v47 }
 0x34d   : > { %v2052_v0 = vpop.f32.mrb[8].mxu0 }
 0x34e   : > { %1668 = vst [vmem:[%s2814_s26 + $0x50] sm:$0xff] %v2052_v0  ;;  %v1563_v23 = vpop.f32.mrb[9].mxu0 }
 0x34f   : > { %1666 = vst [vmem:[%s2814_s26 + $0x40] sm:$0xff] %v1563_v23  ;;  %v2053_v16 = vpop.f32.mrb[10].mxu0 }
 0x350   : > { %1669 = vst [vmem:[%s2814_s26 + $0x58] sm:$0xff] %v2053_v16  ;;  %v1566_v60 = vpop.f32.mrb[11].mxu0 }
 0x351   : > { %1667 = vst [vmem:[%s2814_s26 + $0x48] sm:$0xff] %v1566_v60 }
 0x355   : > { %v2068_v18 = vpop.f32.mrb[8].mxu1 }
 0x356   : > { %1684 = vst [vmem:[%s2814_s26 + $0xd0] sm:$0xff] %v2068_v18  ;;  %v1627_v8 = vpop.f32.mrb[9].mxu1 }
 0x357   : > { %1682 = vst [vmem:[%s2814_s26 + $0xc0] sm:$0xff] %v1627_v8  ;;  %v2069_v9 = vpop.f32.mrb[10].mxu1 }
 0x358   : > { %1685 = vst [vmem:[%s2814_s26 + $0xd8] sm:$0xff] %v2069_v9  ;;  %v1630_v41 = vpop.f32.mrb[11].mxu1 }
 0x359   : > { %1683 = vst [vmem:[%s2814_s26 + $0xc8] sm:$0xff] %v1630_v41 }
 0x372   : > { %v2056_v32 = vpop.f32.mrb[12].mxu0 }
 0x373   : > { %1672 = vst [vmem:[%s2814_s26 + $0x70] sm:$0xff] %v2056_v32  ;;  %v1579_v55 = vpop.f32.mrb[13].mxu0 }
 0x374   : > { %1670 = vst [vmem:[%s2814_s26 + $0x60] sm:$0xff] %v1579_v55  ;;  %v2057_v6 = vpop.f32.mrb[14].mxu0 }
 0x375   : > { %1673 = vst [vmem:[%s2814_s26 + $0x78] sm:$0xff] %v2057_v6  ;;  %v1582_v25 = vpop.f32.mrb[15].mxu0 }
 0x376   : > { %1671 = vst [vmem:[%s2814_s26 + $0x68] sm:$0xff] %v1582_v25 }
 0x37a   : > { %v2072_v27 = vpop.f32.mrb[12].mxu1 }
 0x37b   : > { %1688 = vst [vmem:[%s2814_s26 + $0xf0] sm:$0xff] %v2072_v27  ;;  %v1643_v20 = vpop.f32.mrb[13].mxu1 }
 0x37c   : > { %1686 = vst [vmem:[%s2814_s26 + $0xe0] sm:$0xff] %v1643_v20  ;;  %v2073_v49 = vpop.f32.mrb[14].mxu1 }
 0x37d   : > { %1689 = vst [vmem:[%s2814_s26 + $0xf8] sm:$0xff] %v2073_v49  ;;  %v1646_v61 = vpop.f32.mrb[15].mxu1 }
 0x37e   : > { %1687 = vst [vmem:[%s2814_s26 + $0xe8] sm:$0xff] %v1646_v61 }
 0x37f PF: > { %s1889_s10 = sshll.u32 %s2412_s20, 12  ;;  %s1704_s24 = sshll.u32 %s2814_s26, 4  ;;  %s3290_s24 = int_to_ptr.vmem [resolvable:$true] %s1704_s24 }
 0x380   : > { %s3287_s6 = scalar_lea.hbm %s3348_s4, %s1889_s10  ;;  %s1691_s16 = scalar_lea.sflag [#allocation8], %s2669_s27 }
 0x381   : > { %s2326_s5 = scalar_lea.vmem %s3290_s24, 4096  ;;  %s2440_s15 = smov [#allocation12]  }
 0x382   : > { %p2327_p6 = scmp.ne.s32.totalorder %s3290_s24, %s2326_s5  ;;  %s2330_s14 = sshll.u32 %s2440_s15, 4  ;;  %s2331_s14 = int_to_ptr.vmem [resolvable:$false] %s2330_s14 }
 0x383   : > { %s2332_s20 = scalar_lea.vmem %s2331_s14, 8192  ;;  %p2333_p7 = scmp.lt.s32.totalorder %s3290_s24, %s2331_s14 }
 0x384   : > { %p2328_p13 = pnand %p2327_p6, %p2613_p8  ;;  %p2334_p12 = scmp.lt.s32.totalorder %s2332_s20, %s2326_s5 }
 0x386   : > { %p2329_p3 = pneg %p2328_p13  ;;  %p2335_p11 = por %p2334_p12, %p2333_p7 }
 0x388   : > { %p2336_p1 = pnand %p2335_p11, %p2329_p3 }
 0x38a   : > { %2339 = shalt.err (!%p2336_p1)
}
 0x38b   : > { %s2340_s30 = scalar_lea.hbm %s3287_s6, 4096  ;;  %s2344_s21 = scalar_lea.hbm %s3348_s4, 8192 }
 0x38c   : > { %p2341_p5 = scmp.ne.s32.totalorder %s3287_s6, %s2340_s30  ;;  %p2345_p2 = scmp.lt.u32.totalorder %s3287_s6, %s3348_s4 }
 0x38d   : > { %p2346_p10 = scmp.lt.u32.totalorder %s2344_s21, %s2340_s30  ;;  %p2348_p6 = scmp.lt.u32.totalorder %s2340_s30, %s3287_s6 }
 0x38e   : > { %p2342_p9 = pnand %p2341_p5, %p2613_p8 }
 0x38f   : > { %p2347_p4 = por %p2346_p10, %p2345_p2 }
 0x390   : > { %p2343_p0 = pneg %p2342_p9 }
 0x391   : > { %p2349_p13 = por %p2348_p6, %p2347_p4 }
 0x393   : > { %p2350_p3 = pnand %p2349_p13, %p2343_p0 }
 0x395   : > { %2353 = shalt.err (!%p2350_p3)
}
 0x396   : > { %s2441_s13 = smov 128   ;;  %s2442_s7 = smov 8  }
 0x397   : > { %2116 = dma.vmem_to_hbm [thread:$0]  (%p2613_p8), %s3290_s24, 4096, %s3287_s6, %s1691_s16, %s2441_s13, %s2441_s13, %s2442_s7  }
 0x398 PF: > { %p2138_p7 = scmp.ge.s32.totalorder %s2428_s0, 2  ;;  %s1719_s5 = sand.u32 1, %s2400_s17  }
 0x399   : > { %p3377_p12 = scmp.ne.s32.totalorder %s3359_s29, 0  ;;  %s1720_s15 = scalar_lea.sflag [#allocation8], %s1719_s5 }
 0x39b   : > { %p2130_p11 = pnand %p2138_p7, %p3377_p12 }
 0x39d   : > { %2395 = dma.done.wait (!%p2130_p11), %s1720_s15, 4096  }
 0x39e   : > { %2397 = vsyncadd (!%p2130_p11), %s1720_s15, 4294963200  ;;  %s22_s0 = sadd.s32 1, %s2428_s0   ;;  %s3378_s17 = smov %s2404_s18 }
 0x39f   : > { %p19_p1 = scmp.ge.s32.totalorder %s22_s0, 6   ;;  %s3379_s18 = smov %s2408_s19 }
 0x3a0   : > { %s3380_s19 = smov %s2621_s25  ;;  %s3381_s20 = smov %s2420_s22 }
 0x3a1   : > { %s3382_s21 = smov %s2424_s23  ;;  %s3383_s22 = smov %s3386_s11 }
 0x3a2   : > { %s3384_s23 = smov %s3390_s12  ;;  %21 = sbr.rel (!%p19_p1) target bundleno = 10 (0xa), region = 97 }
 0x3a9   :  { %1725 = vsyncpa [#allocation7], 1 }
 0x3aa   :  { %1727 = vsyncpa [#allocation7 + $0x1], 1 }
 0x3ab   :  { %1728 = vsyncpa [#allocation10], 1 }
 0x3ac   :  { %1729 = vsyncpa [#allocation8], 1 }
 0x3ad   :  { %1731 = vsyncpa [#allocation8 + $0x1], 1 }

</bundles_post_ra>
